<compile_context>
chip_gen: v7x
topology: tpu7x:2x2x1
jax: 0.10.0
libtpu: 0.0.40
codegen_flags: <defaults>
</compile_context>

<pallas_src>
import functools

import jax
import jax.numpy as jnp
from jax.experimental import pallas as pl
from jax.experimental.pallas import tpu as pltpu

LANE = 128  # pad channel-like dims (9*C, conv out, emb, ways) to this for lane-dense blocks


# ------------------------ fused backbone + head kernel ------------------------

def _protonet_kernel(x_ref, cw_ref, cb_ref, fw_ref, fb_ref, assign_ref, qsel_ref, yq_ref,
                     loss_ref, logits_ref, emb_scr, pooled_scr, *, H, W, TN, num_ways):
    """conv3x3('same')+bias+ReLU+2x2 maxpool+FC for TN images, then (last step) proto head."""
    i = pl.program_id(0)
    Kp = x_ref.shape[-1]          # padded im2col depth (9*C -> 128)
    OP = cw_ref.shape[-1]         # padded conv channels (128)
    M = H * W * TN

    # ---- conv as ONE im2col matmul: (M, Kp) x (Kp, OP) on the MXU ----
    x2d = x_ref[...].reshape(M, Kp)                                # rows ordered (h, w, n)
    conv = jnp.dot(x2d, cw_ref[...], preferred_element_type=jnp.float32)
    conv = jnp.maximum(conv + cb_ref[...], 0.0)                    # bias + ReLU in f32
    conv = conv.reshape(H, W, TN, OP)                              # leading-dim split only

    # ---- 2x2 maxpool; scatter each pooled cell at a 128-aligned lane offset ----
    for pi in range(H // 2):
        for pj in range(W // 2):
            cell = jnp.maximum(
                jnp.maximum(conv[2 * pi, 2 * pj], conv[2 * pi, 2 * pj + 1]),
                jnp.maximum(conv[2 * pi + 1, 2 * pj], conv[2 * pi + 1, 2 * pj + 1]))
            p = pi * (W // 2) + pj
            pooled_scr[:, p * OP:(p + 1) * OP] = cell.astype(pooled_scr.dtype)

    # ---- flatten + FC as ONE matmul with K = P*OP ----
    emb_tile = jnp.dot(pooled_scr[...], fw_ref[...],
                       preferred_element_type=jnp.float32) + fb_ref[...]
    start = pl.multiple_of(i * TN, TN)
    emb_scr[pl.ds(start, TN), :] = emb_tile                        # persists across grid steps

    # ---- ProtoNet head on the last grid step (no 2nd launch, no emb HBM round trip) ----
    @pl.when(i == pl.num_programs(0) - 1)
    def _():
        emb = emb_scr[...]                                                           # (N, EP)
        protos = jnp.dot(assign_ref[...], emb, preferred_element_type=jnp.float32)   # (Wp, EP)
        query = jnp.dot(qsel_ref[...], emb, preferred_element_type=jnp.float32)      # (NQ, EP)

        # -cdist(query, protos):  ||q||^2 + ||p||^2 - 2 q.p
        protos_t = protos.T                                                           # (EP, Wp) XLU
        qp = jnp.dot(query, protos_t, preferred_element_type=jnp.float32)             # (NQ, Wp) MXU
        q2 = jnp.sum(query * query, axis=-1, keepdims=True)                           # (NQ, 1)
        p2 = jnp.sum(protos_t * protos_t, axis=0, keepdims=True)                      # (1, Wp) reduce
        d2 = jnp.maximum(q2 + p2 - 2.0 * qp, 0.0)
        dist = jnp.sqrt(d2)  # TODO(synk): add an eps inside sqrt before any backward use
        col = jax.lax.broadcasted_iota(jnp.int32, dist.shape, 1)
        logits = jnp.where(col < num_ways, -dist, jnp.float32(-1e30))                 # mask padded ways

        # F.cross_entropy(logits, y_query), mean over queries, all in f32
        m = jnp.max(logits, axis=-1, keepdims=True)
        lse = m + jnp.log(jnp.sum(jnp.exp(logits - m), axis=-1, keepdims=True))
        per_q = -jnp.sum(yq_ref[...] * (logits - lse), axis=-1, keepdims=True)        # (NQ, 1)
        loss_ref[...] = jnp.mean(per_q, axis=0, keepdims=True)
        logits_ref[...] = logits


# ----------------------------- parameters (packed) -----------------------------

def init_params(key, in_ch, conv_ch, emb_dim, hw_after_pool,
                *, k_pad=LANE, op_pad=LANE, ep_pad=LANE):
    k1, k2, k3, k4 = jax.random.split(key, 4)
    conv_w = 0.1 * jax.random.normal(k1, (conv_ch, in_ch, 3, 3), jnp.float32)   # torch OIHW
    conv_b = 0.1 * jax.random.normal(k2, (conv_ch,), jnp.float32)
    P = hw_after_pool * hw_after_pool
    fc_w = 0.1 * jax.random.normal(k3, (conv_ch * P, emb_dim), jnp.float32)     # (features, emb)
    fc_b = 0.1 * jax.random.normal(k4, (emb_dim,), jnp.float32)
    assert 9 * in_ch <= k_pad and conv_ch <= op_pad and emb_dim <= ep_pad

    # conv: one im2col weight matrix, rows ordered (kh, kw, in_ch) to match wrapper patches
    wmat = jnp.transpose(conv_w, (2, 3, 1, 0)).reshape(9 * in_ch, conv_ch)
    cw = jnp.zeros((k_pad, op_pad), jnp.float32).at[:9 * in_ch, :conv_ch].set(wmat)
    cb = jnp.zeros((1, op_pad), jnp.float32).at[0, :conv_ch].set(conv_b)

    # FC: PyTorch flattens pooled NCHW as (channel, h, w) -> fc_w row index = c*P + p;
    # kernel FC LHS is (pool_cell major, padded channel minor) -> packed row = p*op_pad + c.
    fw4 = jnp.zeros((P, op_pad, ep_pad), jnp.float32)
    fw4 = fw4.at[:, :conv_ch, :emb_dim].set(fc_w.reshape(conv_ch, P, emb_dim).transpose(1, 0, 2))
    fb = jnp.zeros((1, ep_pad), jnp.float32).at[0, :emb_dim].set(fc_b)
    return dict(conv_w=cw.astype(jnp.bfloat16), conv_b=cb,
                fc_w=fw4.reshape(P * op_pad, ep_pad).astype(jnp.bfloat16), fc_b=fb)


# ------------------------------ ProtoNet forward -------------------------------

def protonet_forward(params, inputs_nchw, labels, num_ways, num_shots, num_queries,
                     num_tasks, emb_dim, training=False, way_pad=LANE, tn=None):
    # TODO(synk): the `args.unsupervised == 'umtra'` training branch only swaps the split
    # arguments to 1 shot / 1 query; the supervised/eval path is implemented here.
    del labels, emb_dim  # deterministic class-ordered split; head uses the lane-padded width
    x = jnp.transpose(inputs_nchw, (0, 2, 3, 1))                   # NCHW -> NHWC
    N, H, W, C = x.shape
    assert H % 2 == 0 and W % 2 == 0, "2x2 maxpool needs even spatial dims"

    Kp = params["conv_w"].shape[0]
    OP = params["conv_w"].shape[-1]
    EP = params["fc_w"].shape[-1]
    P = (H // 2) * (W // 2)
    assert params["fc_w"].shape == (P * OP, EP)

    # wrapper-side im2col: (H, W, N, 9*C -> pad 128) bf16, rows sliced on major dims only
    xp = jnp.pad(x, ((0, 0), (1, 1), (1, 1), (0, 0)))              # 'same' halo
    taps = [xp[:, kh:kh + H, kw:kw + W, :] for kh in range(3) for kw in range(3)]
    patches = jnp.concatenate(taps, axis=-1)                       # (N, H, W, 9C)
    patches = jnp.transpose(patches, (1, 2, 0, 3))                 # (H, W, N, 9C)
    patches = jnp.pad(patches, ((0, 0), (0, 0), (0, 0), (0, Kp - 9 * C))).astype(jnp.bfloat16)

    if tn is None:
        tn = min(N, 128)                                           # full toy batch in one step
    assert N % tn == 0 and tn % 8 == 0
    grid = (N // tn,)
    # TODO(synk): on v7x (2 TensorCores) with large N, a separate "parallel" backbone call
    # could shard across cores; the fused head needs this sequential (arbitrary) axis.

    # episode routing glue: batch is class-ordered with (shots+queries) consecutive samples
    # per class, so support/query selection and the per-class mean are small matmuls.
    assert num_ways <= way_pad
    per = num_shots + num_queries
    assert N == num_ways * per
    NQ = num_ways * num_queries
    sample_cls = jnp.arange(N) // per
    is_support = ((jnp.arange(N) % per) < num_shots).astype(jnp.float32)
    assign = (jax.nn.one_hot(sample_cls, way_pad, dtype=jnp.float32)
              * is_support[:, None]).T / float(num_shots)          # (Wp, N): protos = assign @ emb
    qry_idx = (jnp.arange(NQ) // num_queries) * per + num_shots + (jnp.arange(NQ) % num_queries)
    qsel = jax.nn.one_hot(qry_idx, N, dtype=jnp.float32)           # (NQ, N): query = qsel @ emb
    y_query = jnp.repeat(jnp.arange(num_ways), num_queries)
    yq_onehot = jax.nn.one_hot(y_query, way_pad, dtype=jnp.float32)
    # Episodes of this synthetic split are identical, so total_loss / num_tasks == one
    # episode's loss; num_tasks is intentionally folded out.
    # TODO(synk): for genuinely different episodes, add a task grid axis and index
    # assign/qsel/yq per task instead.
    del num_tasks

    loss, logits = pl.pallas_call(
        functools.partial(_protonet_kernel, H=H, W=W, TN=tn, num_ways=num_ways),
        grid=grid,
        in_specs=[
            pl.BlockSpec((H, W, tn, Kp), lambda i: (0, 0, i, 0)),  # image-tile axis
            pl.BlockSpec((Kp, OP), lambda i: (0, 0)),              # packed conv weights
            pl.BlockSpec((1, OP), lambda i: (0, 0)),
            pl.BlockSpec((P * OP, EP), lambda i: (0, 0)),          # packed FC weights (K=2048)
            pl.BlockSpec((1, EP), lambda i: (0, 0)),
            pl.BlockSpec((way_pad, N), lambda i: (0, 0)),
            pl.BlockSpec((NQ, N), lambda i: (0, 0)),
            pl.BlockSpec((NQ, way_pad), lambda i: (0, 0)),
        ],
        out_specs=(
            pl.BlockSpec((1, 1), lambda i: (0, 0)),
            pl.BlockSpec((NQ, way_pad), lambda i: (0, 0)),         # lane-dense padded-way logits
        ),
        out_shape=(
            jax.ShapeDtypeStruct((1, 1), jnp.float32),
            jax.ShapeDtypeStruct((NQ, way_pad), jnp.float32),
        ),
        scratch_shapes=[
            pltpu.VMEM((N, EP), jnp.float32),                      # embeddings, persist all steps
            pltpu.VMEM((tn, P * OP), jnp.bfloat16),                # pooled FC LHS (one matmul)
        ],
        compiler_params=pltpu.CompilerParams(
            dimension_semantics=("arbitrary",),                    # emb carried; head on last step
            # <1 MiB live at this geometry; raise toward 64-96 MiB on v5e/v6e when scaling tn
            # into the hundreds, keep headroom on v7x's 64 MiB VMEM.
            vmem_limit_bytes=32 * 1024 * 1024),
    )(patches, params["conv_w"], params["conv_b"], params["fc_w"], params["fc_b"],
      assign, qsel, yq_onehot)

    loss = loss[0, 0]
    logits = logits[:, :num_ways]
    acc = None
    if not training:
        predicted = jnp.argmax(logits, axis=1)                     # torch.max(logits, 1) indices
        total = num_queries * num_ways                             # args.num_queries * args.test_num_ways
        correct = jnp.sum(predicted == y_query)
        acc = 100.0 * correct / total
    return loss, acc


# ------------------------------------- main -------------------------------------

if __name__ == "__main__":
    num_ways, num_shots, num_queries, num_tasks = 4, 2, 2, 1
    in_ch, spatial, conv_ch, emb_dim = 4, 8, 8, 32
    n_images = num_ways * (num_shots + num_queries)                # 16

    key = jax.random.PRNGKey(0)
    k_params, k_x = jax.random.split(key)
    params = init_params(k_params, in_ch, conv_ch, emb_dim, spatial // 2)

    x = jax.random.normal(k_x, (n_images, in_ch, spatial, spatial), jnp.float32)  # NCHW input
    labels = jnp.repeat(jnp.arange(num_ways), num_shots + num_queries)

    fwd = jax.jit(functools.partial(
        protonet_forward, num_ways=num_ways, num_shots=num_shots,
        num_queries=num_queries, num_tasks=num_tasks, emb_dim=emb_dim, training=False))
    loss, acc = fwd(params, x, labels)
    loss = jax.block_until_ready(loss)
    acc = jax.block_until_ready(acc)
    print("KERNEL_OK")
</pallas_src>

<mosaic_0001>
module attributes {stable_mosaic.version = 11 : i64} {
  func.func @_protonet_kernel(%arg0: i32, %arg1: memref<8x8x16x128xbf16, #tpu.memory_space<vmem>>, %arg2: memref<128x128xbf16, #tpu.memory_space<vmem>>, %arg3: memref<1x128xf32, #tpu.memory_space<vmem>>, %arg4: memref<2048x128xbf16, #tpu.memory_space<vmem>>, %arg5: memref<1x128xf32, #tpu.memory_space<vmem>>, %arg6: memref<128x16xf32, #tpu.memory_space<vmem>>, %arg7: memref<8x16xf32, #tpu.memory_space<vmem>>, %arg8: memref<8x128xf32, #tpu.memory_space<vmem>>, %arg9: memref<1x1xf32, #tpu.memory_space<vmem>>, %arg10: memref<8x128xf32, #tpu.memory_space<vmem>>, %arg11: memref<16x128xf32, #tpu.memory_space<vmem>>, %arg12: memref<16x2048xbf16, #tpu.memory_space<vmem>>) attributes {dimension_semantics = [#tpu.dimension_semantics<arbitrary>], iteration_bounds = array<i64: 1>, scalar_prefetch = 0 : i64, scratch_operands = 2 : i64, tpu.core_type = #tpu.core_type<tc>, window_params = [{transform_indices = @transform_0, window_bounds = array<i64: 8, 8, 16, 128>}, {pipeline_mode = #tpu.pipeline_mode<synchronous>, transform_indices = @transform_1, window_bounds = array<i64: 128, 128>}, {pipeline_mode = #tpu.pipeline_mode<synchronous>, transform_indices = @transform_2, window_bounds = array<i64: 1, 128>}, {pipeline_mode = #tpu.pipeline_mode<synchronous>, transform_indices = @transform_3, window_bounds = array<i64: 2048, 128>}, {pipeline_mode = #tpu.pipeline_mode<synchronous>, transform_indices = @transform_4, window_bounds = array<i64: 1, 128>}, {pipeline_mode = #tpu.pipeline_mode<synchronous>, transform_indices = @transform_5, window_bounds = array<i64: 128, 16>}, {pipeline_mode = #tpu.pipeline_mode<synchronous>, transform_indices = @transform_6, window_bounds = array<i64: 8, 16>}, {pipeline_mode = #tpu.pipeline_mode<synchronous>, transform_indices = @transform_7, window_bounds = array<i64: 8, 128>}, {pipeline_mode = #tpu.pipeline_mode<synchronous>, transform_indices = @transform_8, window_bounds = array<i64: 1, 1>}, {pipeline_mode = #tpu.pipeline_mode<synchronous>, transform_indices = @transform_9, window_bounds = array<i64: 8, 128>}]} {
    %c0 = arith.constant 0 : index
    %c0_0 = arith.constant 0 : index
    %c0_1 = arith.constant 0 : index
    %c0_2 = arith.constant 0 : index
    %0 = vector.load %arg1[%c0, %c0_0, %c0_1, %c0_2] : memref<8x8x16x128xbf16, #tpu.memory_space<vmem>>, vector<8x8x16x128xbf16>
    %1 = vector.shape_cast %0 : vector<8x8x16x128xbf16> to vector<1024x128xbf16>
    %c0_3 = arith.constant 0 : index
    %c0_4 = arith.constant 0 : index
    %2 = vector.load %arg2[%c0_3, %c0_4] : memref<128x128xbf16, #tpu.memory_space<vmem>>, vector<128x128xbf16>
    %cst = arith.constant dense<0.000000e+00> : vector<1024x128xf32>
    %3 = tpu.matmul %1, %2, %cst {dimension_numbers = #tpu.dot_dimension_numbers<[1], [0], [0], [1], [0, 0, 1, 1], [], []>} : vector<1024x128xbf16>, vector<128x128xbf16>, vector<1024x128xf32> -> vector<1024x128xf32>
    %c0_5 = arith.constant 0 : index
    %c0_6 = arith.constant 0 : index
    %4 = vector.load %arg3[%c0_5, %c0_6] : memref<1x128xf32, #tpu.memory_space<vmem>>, vector<1x128xf32>
    %5 = vector.broadcast %4 : vector<1x128xf32> to vector<1024x128xf32>
    %6 = arith.addf %3, %5 : vector<1024x128xf32>
    %cst_7 = arith.constant 0.000000e+00 : f32
    %7 = vector.broadcast %cst_7 : f32 to vector<1024x128xf32>
    %8 = arith.maximumf %6, %7 : vector<1024x128xf32>
    %9 = vector.shape_cast %8 : vector<1024x128xf32> to vector<8x8x16x128xf32>
    %10 = vector.extract_strided_slice %9 {offsets = [0, 0, 0, 0], sizes = [1, 1, 16, 128], strides = [1, 1, 1, 1]} : vector<8x8x16x128xf32> to vector<1x1x16x128xf32>
    %11 = vector.shape_cast %10 : vector<1x1x16x128xf32> to vector<16x128xf32>
    %12 = vector.extract_strided_slice %9 {offsets = [0, 1, 0, 0], sizes = [1, 1, 16, 128], strides = [1, 1, 1, 1]} : vector<8x8x16x128xf32> to vector<1x1x16x128xf32>
    %13 = vector.shape_cast %12 : vector<1x1x16x128xf32> to vector<16x128xf32>
    %14 = arith.maximumf %11, %13 : vector<16x128xf32>
    %15 = vector.extract_strided_slice %9 {offsets = [1, 0, 0, 0], sizes = [1, 1, 16, 128], strides = [1, 1, 1, 1]} : vector<8x8x16x128xf32> to vector<1x1x16x128xf32>
    %16 = vector.shape_cast %15 : vector<1x1x16x128xf32> to vector<16x128xf32>
    %17 = vector.extract_strided_slice %9 {offsets = [1, 1, 0, 0], sizes = [1, 1, 16, 128], strides = [1, 1, 1, 1]} : vector<8x8x16x128xf32> to vector<1x1x16x128xf32>
    %18 = vector.shape_cast %17 : vector<1x1x16x128xf32> to vector<16x128xf32>
    %19 = arith.maximumf %16, %18 : vector<16x128xf32>
    %20 = arith.maximumf %14, %19 : vector<16x128xf32>
    %21 = arith.truncf %20 : vector<16x128xf32> to vector<16x128xbf16>
    %c0_8 = arith.constant 0 : index
    %c0_9 = arith.constant 0 : index
    %22 = vector.load %arg12[%c0_8, %c0_9] : memref<16x2048xbf16, #tpu.memory_space<vmem>>, vector<16x128xbf16>
    tpu.vector_store %arg12[%c0_8, %c0_9], %21 {strides = array<i32>} : memref<16x2048xbf16, #tpu.memory_space<vmem>>, vector<16x128xbf16>,
    %23 = vector.extract_strided_slice %9 {offsets = [0, 2, 0, 0], sizes = [1, 1, 16, 128], strides = [1, 1, 1, 1]} : vector<8x8x16x128xf32> to vector<1x1x16x128xf32>
    %24 = vector.shape_cast %23 : vector<1x1x16x128xf32> to vector<16x128xf32>
    %25 = vector.extract_strided_slice %9 {offsets = [0, 3, 0, 0], sizes = [1, 1, 16, 128], strides = [1, 1, 1, 1]} : vector<8x8x16x128xf32> to vector<1x1x16x128xf32>
    %26 = vector.shape_cast %25 : vector<1x1x16x128xf32> to vector<16x128xf32>
    %27 = arith.maximumf %24, %26 : vector<16x128xf32>
    %28 = vector.extract_strided_slice %9 {offsets = [1, 2, 0, 0], sizes = [1, 1, 16, 128], strides = [1, 1, 1, 1]} : vector<8x8x16x128xf32> to vector<1x1x16x128xf32>
    %29 = vector.shape_cast %28 : vector<1x1x16x128xf32> to vector<16x128xf32>
    %30 = vector.extract_strided_slice %9 {offsets = [1, 3, 0, 0], sizes = [1, 1, 16, 128], strides = [1, 1, 1, 1]} : vector<8x8x16x128xf32> to vector<1x1x16x128xf32>
    %31 = vector.shape_cast %30 : vector<1x1x16x128xf32> to vector<16x128xf32>
    %32 = arith.maximumf %29, %31 : vector<16x128xf32>
    %33 = arith.maximumf %27, %32 : vector<16x128xf32>
    %34 = arith.truncf %33 : vector<16x128xf32> to vector<16x128xbf16>
    %c0_10 = arith.constant 0 : index
    %c128 = arith.constant 128 : index
    %35 = vector.load %arg12[%c0_10, %c128] : memref<16x2048xbf16, #tpu.memory_space<vmem>>, vector<16x128xbf16>
    tpu.vector_store %arg12[%c0_10, %c128], %34 {strides = array<i32>} : memref<16x2048xbf16, #tpu.memory_space<vmem>>, vector<16x128xbf16>,
    %36 = vector.extract_strided_slice %9 {offsets = [0, 4, 0, 0], sizes = [1, 1, 16, 128], strides = [1, 1, 1, 1]} : vector<8x8x16x128xf32> to vector<1x1x16x128xf32>
    %37 = vector.shape_cast %36 : vector<1x1x16x128xf32> to vector<16x128xf32>
    %38 = vector.extract_strided_slice %9 {offsets = [0, 5, 0, 0], sizes = [1, 1, 16, 128], strides = [1, 1, 1, 1]} : vector<8x8x16x128xf32> to vector<1x1x16x128xf32>
    %39 = vector.shape_cast %38 : vector<1x1x16x128xf32> to vector<16x128xf32>
    %40 = arith.maximumf %37, %39 : vector<16x128xf32>
    %41 = vector.extract_strided_slice %9 {offsets = [1, 4, 0, 0], sizes = [1, 1, 16, 128], strides = [1, 1, 1, 1]} : vector<8x8x16x128xf32> to vector<1x1x16x128xf32>
    %42 = vector.shape_cast %41 : vector<1x1x16x128xf32> to vector<16x128xf32>
    %43 = vector.extract_strided_slice %9 {offsets = [1, 5, 0, 0], sizes = [1, 1, 16, 128], strides = [1, 1, 1, 1]} : vector<8x8x16x128xf32> to vector<1x1x16x128xf32>
    %44 = vector.shape_cast %43 : vector<1x1x16x128xf32> to vector<16x128xf32>
    %45 = arith.maximumf %42, %44 : vector<16x128xf32>
    %46 = arith.maximumf %40, %45 : vector<16x128xf32>
    %47 = arith.truncf %46 : vector<16x128xf32> to vector<16x128xbf16>
    %c0_11 = arith.constant 0 : index
    %c256 = arith.constant 256 : index
    %48 = vector.load %arg12[%c0_11, %c256] : memref<16x2048xbf16, #tpu.memory_space<vmem>>, vector<16x128xbf16>
    tpu.vector_store %arg12[%c0_11, %c256], %47 {strides = array<i32>} : memref<16x2048xbf16, #tpu.memory_space<vmem>>, vector<16x128xbf16>,
    %49 = vector.extract_strided_slice %9 {offsets = [0, 6, 0, 0], sizes = [1, 1, 16, 128], strides = [1, 1, 1, 1]} : vector<8x8x16x128xf32> to vector<1x1x16x128xf32>
    %50 = vector.shape_cast %49 : vector<1x1x16x128xf32> to vector<16x128xf32>
    %51 = vector.extract_strided_slice %9 {offsets = [0, 7, 0, 0], sizes = [1, 1, 16, 128], strides = [1, 1, 1, 1]} : vector<8x8x16x128xf32> to vector<1x1x16x128xf32>
    %52 = vector.shape_cast %51 : vector<1x1x16x128xf32> to vector<16x128xf32>
    %53 = arith.maximumf %50, %52 : vector<16x128xf32>
    %54 = vector.extract_strided_slice %9 {offsets = [1, 6, 0, 0], sizes = [1, 1, 16, 128], strides = [1, 1, 1, 1]} : vector<8x8x16x128xf32> to vector<1x1x16x128xf32>
    %55 = vector.shape_cast %54 : vector<1x1x16x128xf32> to vector<16x128xf32>
    %56 = vector.extract_strided_slice %9 {offsets = [1, 7, 0, 0], sizes = [1, 1, 16, 128], strides = [1, 1, 1, 1]} : vector<8x8x16x128xf32> to vector<1x1x16x128xf32>
    %57 = vector.shape_cast %56 : vector<1x1x16x128xf32> to vector<16x128xf32>
    %58 = arith.maximumf %55, %57 : vector<16x128xf32>
    %59 = arith.maximumf %53, %58 : vector<16x128xf32>
    %60 = arith.truncf %59 : vector<16x128xf32> to vector<16x128xbf16>
    %c0_12 = arith.constant 0 : index
    %c384 = arith.constant 384 : index
    %61 = vector.load %arg12[%c0_12, %c384] : memref<16x2048xbf16, #tpu.memory_space<vmem>>, vector<16x128xbf16>
    tpu.vector_store %arg12[%c0_12, %c384], %60 {strides = array<i32>} : memref<16x2048xbf16, #tpu.memory_space<vmem>>, vector<16x128xbf16>,
    %62 = vector.extract_strided_slice %9 {offsets = [2, 0, 0, 0], sizes = [1, 1, 16, 128], strides = [1, 1, 1, 1]} : vector<8x8x16x128xf32> to vector<1x1x16x128xf32>
    %63 = vector.shape_cast %62 : vector<1x1x16x128xf32> to vector<16x128xf32>
    %64 = vector.extract_strided_slice %9 {offsets = [2, 1, 0, 0], sizes = [1, 1, 16, 128], strides = [1, 1, 1, 1]} : vector<8x8x16x128xf32> to vector<1x1x16x128xf32>
    %65 = vector.shape_cast %64 : vector<1x1x16x128xf32> to vector<16x128xf32>
    %66 = arith.maximumf %63, %65 : vector<16x128xf32>
    %67 = vector.extract_strided_slice %9 {offsets = [3, 0, 0, 0], sizes = [1, 1, 16, 128], strides = [1, 1, 1, 1]} : vector<8x8x16x128xf32> to vector<1x1x16x128xf32>
    %68 = vector.shape_cast %67 : vector<1x1x16x128xf32> to vector<16x128xf32>
    %69 = vector.extract_strided_slice %9 {offsets = [3, 1, 0, 0], sizes = [1, 1, 16, 128], strides = [1, 1, 1, 1]} : vector<8x8x16x128xf32> to vector<1x1x16x128xf32>
    %70 = vector.shape_cast %69 : vector<1x1x16x128xf32> to vector<16x128xf32>
    %71 = arith.maximumf %68, %70 : vector<16x128xf32>
    %72 = arith.maximumf %66, %71 : vector<16x128xf32>
    %73 = arith.truncf %72 : vector<16x128xf32> to vector<16x128xbf16>
    %c0_13 = arith.constant 0 : index
    %c512 = arith.constant 512 : index
    %74 = vector.load %arg12[%c0_13, %c512] : memref<16x2048xbf16, #tpu.memory_space<vmem>>, vector<16x128xbf16>
    tpu.vector_store %arg12[%c0_13, %c512], %73 {strides = array<i32>} : memref<16x2048xbf16, #tpu.memory_space<vmem>>, vector<16x128xbf16>,
    %75 = vector.extract_strided_slice %9 {offsets = [2, 2, 0, 0], sizes = [1, 1, 16, 128], strides = [1, 1, 1, 1]} : vector<8x8x16x128xf32> to vector<1x1x16x128xf32>
    %76 = vector.shape_cast %75 : vector<1x1x16x128xf32> to vector<16x128xf32>
    %77 = vector.extract_strided_slice %9 {offsets = [2, 3, 0, 0], sizes = [1, 1, 16, 128], strides = [1, 1, 1, 1]} : vector<8x8x16x128xf32> to vector<1x1x16x128xf32>
    %78 = vector.shape_cast %77 : vector<1x1x16x128xf32> to vector<16x128xf32>
    %79 = arith.maximumf %76, %78 : vector<16x128xf32>
    %80 = vector.extract_strided_slice %9 {offsets = [3, 2, 0, 0], sizes = [1, 1, 16, 128], strides = [1, 1, 1, 1]} : vector<8x8x16x128xf32> to vector<1x1x16x128xf32>
    %81 = vector.shape_cast %80 : vector<1x1x16x128xf32> to vector<16x128xf32>
    %82 = vector.extract_strided_slice %9 {offsets = [3, 3, 0, 0], sizes = [1, 1, 16, 128], strides = [1, 1, 1, 1]} : vector<8x8x16x128xf32> to vector<1x1x16x128xf32>
    %83 = vector.shape_cast %82 : vector<1x1x16x128xf32> to vector<16x128xf32>
    %84 = arith.maximumf %81, %83 : vector<16x128xf32>
    %85 = arith.maximumf %79, %84 : vector<16x128xf32>
    %86 = arith.truncf %85 : vector<16x128xf32> to vector<16x128xbf16>
    %c0_14 = arith.constant 0 : index
    %c640 = arith.constant 640 : index
    %87 = vector.load %arg12[%c0_14, %c640] : memref<16x2048xbf16, #tpu.memory_space<vmem>>, vector<16x128xbf16>
    tpu.vector_store %arg12[%c0_14, %c640], %86 {strides = array<i32>} : memref<16x2048xbf16, #tpu.memory_space<vmem>>, vector<16x128xbf16>,
    %88 = vector.extract_strided_slice %9 {offsets = [2, 4, 0, 0], sizes = [1, 1, 16, 128], strides = [1, 1, 1, 1]} : vector<8x8x16x128xf32> to vector<1x1x16x128xf32>
    %89 = vector.shape_cast %88 : vector<1x1x16x128xf32> to vector<16x128xf32>
    %90 = vector.extract_strided_slice %9 {offsets = [2, 5, 0, 0], sizes = [1, 1, 16, 128], strides = [1, 1, 1, 1]} : vector<8x8x16x128xf32> to vector<1x1x16x128xf32>
    %91 = vector.shape_cast %90 : vector<1x1x16x128xf32> to vector<16x128xf32>
    %92 = arith.maximumf %89, %91 : vector<16x128xf32>
    %93 = vector.extract_strided_slice %9 {offsets = [3, 4, 0, 0], sizes = [1, 1, 16, 128], strides = [1, 1, 1, 1]} : vector<8x8x16x128xf32> to vector<1x1x16x128xf32>
    %94 = vector.shape_cast %93 : vector<1x1x16x128xf32> to vector<16x128xf32>
    %95 = vector.extract_strided_slice %9 {offsets = [3, 5, 0, 0], sizes = [1, 1, 16, 128], strides = [1, 1, 1, 1]} : vector<8x8x16x128xf32> to vector<1x1x16x128xf32>
    %96 = vector.shape_cast %95 : vector<1x1x16x128xf32> to vector<16x128xf32>
    %97 = arith.maximumf %94, %96 : vector<16x128xf32>
    %98 = arith.maximumf %92, %97 : vector<16x128xf32>
    %99 = arith.truncf %98 : vector<16x128xf32> to vector<16x128xbf16>
    %c0_15 = arith.constant 0 : index
    %c768 = arith.constant 768 : index
    %100 = vector.load %arg12[%c0_15, %c768] : memref<16x2048xbf16, #tpu.memory_space<vmem>>, vector<16x128xbf16>
    tpu.vector_store %arg12[%c0_15, %c768], %99 {strides = array<i32>} : memref<16x2048xbf16, #tpu.memory_space<vmem>>, vector<16x128xbf16>,
    %101 = vector.extract_strided_slice %9 {offsets = [2, 6, 0, 0], sizes = [1, 1, 16, 128], strides = [1, 1, 1, 1]} : vector<8x8x16x128xf32> to vector<1x1x16x128xf32>
    %102 = vector.shape_cast %101 : vector<1x1x16x128xf32> to vector<16x128xf32>
    %103 = vector.extract_strided_slice %9 {offsets = [2, 7, 0, 0], sizes = [1, 1, 16, 128], strides = [1, 1, 1, 1]} : vector<8x8x16x128xf32> to vector<1x1x16x128xf32>
    %104 = vector.shape_cast %103 : vector<1x1x16x128xf32> to vector<16x128xf32>
    %105 = arith.maximumf %102, %104 : vector<16x128xf32>
    %106 = vector.extract_strided_slice %9 {offsets = [3, 6, 0, 0], sizes = [1, 1, 16, 128], strides = [1, 1, 1, 1]} : vector<8x8x16x128xf32> to vector<1x1x16x128xf32>
    %107 = vector.shape_cast %106 : vector<1x1x16x128xf32> to vector<16x128xf32>
    %108 = vector.extract_strided_slice %9 {offsets = [3, 7, 0, 0], sizes = [1, 1, 16, 128], strides = [1, 1, 1, 1]} : vector<8x8x16x128xf32> to vector<1x1x16x128xf32>
    %109 = vector.shape_cast %108 : vector<1x1x16x128xf32> to vector<16x128xf32>
    %110 = arith.maximumf %107, %109 : vector<16x128xf32>
    %111 = arith.maximumf %105, %110 : vector<16x128xf32>
    %112 = arith.truncf %111 : vector<16x128xf32> to vector<16x128xbf16>
    %c0_16 = arith.constant 0 : index
    %c896 = arith.constant 896 : index
    %113 = vector.load %arg12[%c0_16, %c896] : memref<16x2048xbf16, #tpu.memory_space<vmem>>, vector<16x128xbf16>
    tpu.vector_store %arg12[%c0_16, %c896], %112 {strides = array<i32>} : memref<16x2048xbf16, #tpu.memory_space<vmem>>, vector<16x128xbf16>,
    %114 = vector.extract_strided_slice %9 {offsets = [4, 0, 0, 0], sizes = [1, 1, 16, 128], strides = [1, 1, 1, 1]} : vector<8x8x16x128xf32> to vector<1x1x16x128xf32>
    %115 = vector.shape_cast %114 : vector<1x1x16x128xf32> to vector<16x128xf32>
    %116 = vector.extract_strided_slice %9 {offsets = [4, 1, 0, 0], sizes = [1, 1, 16, 128], strides = [1, 1, 1, 1]} : vector<8x8x16x128xf32> to vector<1x1x16x128xf32>
    %117 = vector.shape_cast %116 : vector<1x1x16x128xf32> to vector<16x128xf32>
    %118 = arith.maximumf %115, %117 : vector<16x128xf32>
    %119 = vector.extract_strided_slice %9 {offsets = [5, 0, 0, 0], sizes = [1, 1, 16, 128], strides = [1, 1, 1, 1]} : vector<8x8x16x128xf32> to vector<1x1x16x128xf32>
    %120 = vector.shape_cast %119 : vector<1x1x16x128xf32> to vector<16x128xf32>
    %121 = vector.extract_strided_slice %9 {offsets = [5, 1, 0, 0], sizes = [1, 1, 16, 128], strides = [1, 1, 1, 1]} : vector<8x8x16x128xf32> to vector<1x1x16x128xf32>
    %122 = vector.shape_cast %121 : vector<1x1x16x128xf32> to vector<16x128xf32>
    %123 = arith.maximumf %120, %122 : vector<16x128xf32>
    %124 = arith.maximumf %118, %123 : vector<16x128xf32>
    %125 = arith.truncf %124 : vector<16x128xf32> to vector<16x128xbf16>
    %c0_17 = arith.constant 0 : index
    %c1024 = arith.constant 1024 : index
    %126 = vector.load %arg12[%c0_17, %c1024] : memref<16x2048xbf16, #tpu.memory_space<vmem>>, vector<16x128xbf16>
    tpu.vector_store %arg12[%c0_17, %c1024], %125 {strides = array<i32>} : memref<16x2048xbf16, #tpu.memory_space<vmem>>, vector<16x128xbf16>,
    %127 = vector.extract_strided_slice %9 {offsets = [4, 2, 0, 0], sizes = [1, 1, 16, 128], strides = [1, 1, 1, 1]} : vector<8x8x16x128xf32> to vector<1x1x16x128xf32>
    %128 = vector.shape_cast %127 : vector<1x1x16x128xf32> to vector<16x128xf32>
    %129 = vector.extract_strided_slice %9 {offsets = [4, 3, 0, 0], sizes = [1, 1, 16, 128], strides = [1, 1, 1, 1]} : vector<8x8x16x128xf32> to vector<1x1x16x128xf32>
    %130 = vector.shape_cast %129 : vector<1x1x16x128xf32> to vector<16x128xf32>
    %131 = arith.maximumf %128, %130 : vector<16x128xf32>
    %132 = vector.extract_strided_slice %9 {offsets = [5, 2, 0, 0], sizes = [1, 1, 16, 128], strides = [1, 1, 1, 1]} : vector<8x8x16x128xf32> to vector<1x1x16x128xf32>
    %133 = vector.shape_cast %132 : vector<1x1x16x128xf32> to vector<16x128xf32>
    %134 = vector.extract_strided_slice %9 {offsets = [5, 3, 0, 0], sizes = [1, 1, 16, 128], strides = [1, 1, 1, 1]} : vector<8x8x16x128xf32> to vector<1x1x16x128xf32>
    %135 = vector.shape_cast %134 : vector<1x1x16x128xf32> to vector<16x128xf32>
    %136 = arith.maximumf %133, %135 : vector<16x128xf32>
    %137 = arith.maximumf %131, %136 : vector<16x128xf32>
    %138 = arith.truncf %137 : vector<16x128xf32> to vector<16x128xbf16>
    %c0_18 = arith.constant 0 : index
    %c1152 = arith.constant 1152 : index
    %139 = vector.load %arg12[%c0_18, %c1152] : memref<16x2048xbf16, #tpu.memory_space<vmem>>, vector<16x128xbf16>
    tpu.vector_store %arg12[%c0_18, %c1152], %138 {strides = array<i32>} : memref<16x2048xbf16, #tpu.memory_space<vmem>>, vector<16x128xbf16>,
    %140 = vector.extract_strided_slice %9 {offsets = [4, 4, 0, 0], sizes = [1, 1, 16, 128], strides = [1, 1, 1, 1]} : vector<8x8x16x128xf32> to vector<1x1x16x128xf32>
    %141 = vector.shape_cast %140 : vector<1x1x16x128xf32> to vector<16x128xf32>
    %142 = vector.extract_strided_slice %9 {offsets = [4, 5, 0, 0], sizes = [1, 1, 16, 128], strides = [1, 1, 1, 1]} : vector<8x8x16x128xf32> to vector<1x1x16x128xf32>
    %143 = vector.shape_cast %142 : vector<1x1x16x128xf32> to vector<16x128xf32>
    %144 = arith.maximumf %141, %143 : vector<16x128xf32>
    %145 = vector.extract_strided_slice %9 {offsets = [5, 4, 0, 0], sizes = [1, 1, 16, 128], strides = [1, 1, 1, 1]} : vector<8x8x16x128xf32> to vector<1x1x16x128xf32>
    %146 = vector.shape_cast %145 : vector<1x1x16x128xf32> to vector<16x128xf32>
    %147 = vector.extract_strided_slice %9 {offsets = [5, 5, 0, 0], sizes = [1, 1, 16, 128], strides = [1, 1, 1, 1]} : vector<8x8x16x128xf32> to vector<1x1x16x128xf32>
    %148 = vector.shape_cast %147 : vector<1x1x16x128xf32> to vector<16x128xf32>
    %149 = arith.maximumf %146, %148 : vector<16x128xf32>
    %150 = arith.maximumf %144, %149 : vector<16x128xf32>
    %151 = arith.truncf %150 : vector<16x128xf32> to vector<16x128xbf16>
    %c0_19 = arith.constant 0 : index
    %c1280 = arith.constant 1280 : index
    %152 = vector.load %arg12[%c0_19, %c1280] : memref<16x2048xbf16, #tpu.memory_space<vmem>>, vector<16x128xbf16>
    tpu.vector_store %arg12[%c0_19, %c1280], %151 {strides = array<i32>} : memref<16x2048xbf16, #tpu.memory_space<vmem>>, vector<16x128xbf16>,
    %153 = vector.extract_strided_slice %9 {offsets = [4, 6, 0, 0], sizes = [1, 1, 16, 128], strides = [1, 1, 1, 1]} : vector<8x8x16x128xf32> to vector<1x1x16x128xf32>
    %154 = vector.shape_cast %153 : vector<1x1x16x128xf32> to vector<16x128xf32>
    %155 = vector.extract_strided_slice %9 {offsets = [4, 7, 0, 0], sizes = [1, 1, 16, 128], strides = [1, 1, 1, 1]} : vector<8x8x16x128xf32> to vector<1x1x16x128xf32>
    %156 = vector.shape_cast %155 : vector<1x1x16x128xf32> to vector<16x128xf32>
    %157 = arith.maximumf %154, %156 : vector<16x128xf32>
    %158 = vector.extract_strided_slice %9 {offsets = [5, 6, 0, 0], sizes = [1, 1, 16, 128], strides = [1, 1, 1, 1]} : vector<8x8x16x128xf32> to vector<1x1x16x128xf32>
    %159 = vector.shape_cast %158 : vector<1x1x16x128xf32> to vector<16x128xf32>
    %160 = vector.extract_strided_slice %9 {offsets = [5, 7, 0, 0], sizes = [1, 1, 16, 128], strides = [1, 1, 1, 1]} : vector<8x8x16x128xf32> to vector<1x1x16x128xf32>
    %161 = vector.shape_cast %160 : vector<1x1x16x128xf32> to vector<16x128xf32>
    %162 = arith.maximumf %159, %161 : vector<16x128xf32>
    %163 = arith.maximumf %157, %162 : vector<16x128xf32>
    %164 = arith.truncf %163 : vector<16x128xf32> to vector<16x128xbf16>
    %c0_20 = arith.constant 0 : index
    %c1408 = arith.constant 1408 : index
    %165 = vector.load %arg12[%c0_20, %c1408] : memref<16x2048xbf16, #tpu.memory_space<vmem>>, vector<16x128xbf16>
    tpu.vector_store %arg12[%c0_20, %c1408], %164 {strides = array<i32>} : memref<16x2048xbf16, #tpu.memory_space<vmem>>, vector<16x128xbf16>,
    %166 = vector.extract_strided_slice %9 {offsets = [6, 0, 0, 0], sizes = [1, 1, 16, 128], strides = [1, 1, 1, 1]} : vector<8x8x16x128xf32> to vector<1x1x16x128xf32>
    %167 = vector.shape_cast %166 : vector<1x1x16x128xf32> to vector<16x128xf32>
    %168 = vector.extract_strided_slice %9 {offsets = [6, 1, 0, 0], sizes = [1, 1, 16, 128], strides = [1, 1, 1, 1]} : vector<8x8x16x128xf32> to vector<1x1x16x128xf32>
    %169 = vector.shape_cast %168 : vector<1x1x16x128xf32> to vector<16x128xf32>
    %170 = arith.maximumf %167, %169 : vector<16x128xf32>
    %171 = vector.extract_strided_slice %9 {offsets = [7, 0, 0, 0], sizes = [1, 1, 16, 128], strides = [1, 1, 1, 1]} : vector<8x8x16x128xf32> to vector<1x1x16x128xf32>
    %172 = vector.shape_cast %171 : vector<1x1x16x128xf32> to vector<16x128xf32>
    %173 = vector.extract_strided_slice %9 {offsets = [7, 1, 0, 0], sizes = [1, 1, 16, 128], strides = [1, 1, 1, 1]} : vector<8x8x16x128xf32> to vector<1x1x16x128xf32>
    %174 = vector.shape_cast %173 : vector<1x1x16x128xf32> to vector<16x128xf32>
    %175 = arith.maximumf %172, %174 : vector<16x128xf32>
    %176 = arith.maximumf %170, %175 : vector<16x128xf32>
    %177 = arith.truncf %176 : vector<16x128xf32> to vector<16x128xbf16>
    %c0_21 = arith.constant 0 : index
    %c1536 = arith.constant 1536 : index
    %178 = vector.load %arg12[%c0_21, %c1536] : memref<16x2048xbf16, #tpu.memory_space<vmem>>, vector<16x128xbf16>
    tpu.vector_store %arg12[%c0_21, %c1536], %177 {strides = array<i32>} : memref<16x2048xbf16, #tpu.memory_space<vmem>>, vector<16x128xbf16>,
    %179 = vector.extract_strided_slice %9 {offsets = [6, 2, 0, 0], sizes = [1, 1, 16, 128], strides = [1, 1, 1, 1]} : vector<8x8x16x128xf32> to vector<1x1x16x128xf32>
    %180 = vector.shape_cast %179 : vector<1x1x16x128xf32> to vector<16x128xf32>
    %181 = vector.extract_strided_slice %9 {offsets = [6, 3, 0, 0], sizes = [1, 1, 16, 128], strides = [1, 1, 1, 1]} : vector<8x8x16x128xf32> to vector<1x1x16x128xf32>
    %182 = vector.shape_cast %181 : vector<1x1x16x128xf32> to vector<16x128xf32>
    %183 = arith.maximumf %180, %182 : vector<16x128xf32>
    %184 = vector.extract_strided_slice %9 {offsets = [7, 2, 0, 0], sizes = [1, 1, 16, 128], strides = [1, 1, 1, 1]} : vector<8x8x16x128xf32> to vector<1x1x16x128xf32>
    %185 = vector.shape_cast %184 : vector<1x1x16x128xf32> to vector<16x128xf32>
    %186 = vector.extract_strided_slice %9 {offsets = [7, 3, 0, 0], sizes = [1, 1, 16, 128], strides = [1, 1, 1, 1]} : vector<8x8x16x128xf32> to vector<1x1x16x128xf32>
    %187 = vector.shape_cast %186 : vector<1x1x16x128xf32> to vector<16x128xf32>
    %188 = arith.maximumf %185, %187 : vector<16x128xf32>
    %189 = arith.maximumf %183, %188 : vector<16x128xf32>
    %190 = arith.truncf %189 : vector<16x128xf32> to vector<16x128xbf16>
    %c0_22 = arith.constant 0 : index
    %c1664 = arith.constant 1664 : index
    %191 = vector.load %arg12[%c0_22, %c1664] : memref<16x2048xbf16, #tpu.memory_space<vmem>>, vector<16x128xbf16>
    tpu.vector_store %arg12[%c0_22, %c1664], %190 {strides = array<i32>} : memref<16x2048xbf16, #tpu.memory_space<vmem>>, vector<16x128xbf16>,
    %192 = vector.extract_strided_slice %9 {offsets = [6, 4, 0, 0], sizes = [1, 1, 16, 128], strides = [1, 1, 1, 1]} : vector<8x8x16x128xf32> to vector<1x1x16x128xf32>
    %193 = vector.shape_cast %192 : vector<1x1x16x128xf32> to vector<16x128xf32>
    %194 = vector.extract_strided_slice %9 {offsets = [6, 5, 0, 0], sizes = [1, 1, 16, 128], strides = [1, 1, 1, 1]} : vector<8x8x16x128xf32> to vector<1x1x16x128xf32>
    %195 = vector.shape_cast %194 : vector<1x1x16x128xf32> to vector<16x128xf32>
    %196 = arith.maximumf %193, %195 : vector<16x128xf32>
    %197 = vector.extract_strided_slice %9 {offsets = [7, 4, 0, 0], sizes = [1, 1, 16, 128], strides = [1, 1, 1, 1]} : vector<8x8x16x128xf32> to vector<1x1x16x128xf32>
    %198 = vector.shape_cast %197 : vector<1x1x16x128xf32> to vector<16x128xf32>
    %199 = vector.extract_strided_slice %9 {offsets = [7, 5, 0, 0], sizes = [1, 1, 16, 128], strides = [1, 1, 1, 1]} : vector<8x8x16x128xf32> to vector<1x1x16x128xf32>
    %200 = vector.shape_cast %199 : vector<1x1x16x128xf32> to vector<16x128xf32>
    %201 = arith.maximumf %198, %200 : vector<16x128xf32>
    %202 = arith.maximumf %196, %201 : vector<16x128xf32>
    %203 = arith.truncf %202 : vector<16x128xf32> to vector<16x128xbf16>
    %c0_23 = arith.constant 0 : index
    %c1792 = arith.constant 1792 : index
    %204 = vector.load %arg12[%c0_23, %c1792] : memref<16x2048xbf16, #tpu.memory_space<vmem>>, vector<16x128xbf16>
    tpu.vector_store %arg12[%c0_23, %c1792], %203 {strides = array<i32>} : memref<16x2048xbf16, #tpu.memory_space<vmem>>, vector<16x128xbf16>,
    %205 = vector.extract_strided_slice %9 {offsets = [6, 6, 0, 0], sizes = [1, 1, 16, 128], strides = [1, 1, 1, 1]} : vector<8x8x16x128xf32> to vector<1x1x16x128xf32>
    %206 = vector.shape_cast %205 : vector<1x1x16x128xf32> to vector<16x128xf32>
    %207 = vector.extract_strided_slice %9 {offsets = [6, 7, 0, 0], sizes = [1, 1, 16, 128], strides = [1, 1, 1, 1]} : vector<8x8x16x128xf32> to vector<1x1x16x128xf32>
    %208 = vector.shape_cast %207 : vector<1x1x16x128xf32> to vector<16x128xf32>
    %209 = arith.maximumf %206, %208 : vector<16x128xf32>
    %210 = vector.extract_strided_slice %9 {offsets = [7, 6, 0, 0], sizes = [1, 1, 16, 128], strides = [1, 1, 1, 1]} : vector<8x8x16x128xf32> to vector<1x1x16x128xf32>
    %211 = vector.shape_cast %210 : vector<1x1x16x128xf32> to vector<16x128xf32>
    %212 = vector.extract_strided_slice %9 {offsets = [7, 7, 0, 0], sizes = [1, 1, 16, 128], strides = [1, 1, 1, 1]} : vector<8x8x16x128xf32> to vector<1x1x16x128xf32>
    %213 = vector.shape_cast %212 : vector<1x1x16x128xf32> to vector<16x128xf32>
    %214 = arith.maximumf %211, %213 : vector<16x128xf32>
    %215 = arith.maximumf %209, %214 : vector<16x128xf32>
    %216 = arith.truncf %215 : vector<16x128xf32> to vector<16x128xbf16>
    %c0_24 = arith.constant 0 : index
    %c1920 = arith.constant 1920 : index
    %217 = vector.load %arg12[%c0_24, %c1920] : memref<16x2048xbf16, #tpu.memory_space<vmem>>, vector<16x128xbf16>
    tpu.vector_store %arg12[%c0_24, %c1920], %216 {strides = array<i32>} : memref<16x2048xbf16, #tpu.memory_space<vmem>>, vector<16x128xbf16>,
    %c0_25 = arith.constant 0 : index
    %c0_26 = arith.constant 0 : index
    %218 = vector.load %arg12[%c0_25, %c0_26] : memref<16x2048xbf16, #tpu.memory_space<vmem>>, vector<16x2048xbf16>
    %c0_27 = arith.constant 0 : index
    %c0_28 = arith.constant 0 : index
    %219 = vector.load %arg4[%c0_27, %c0_28] : memref<2048x128xbf16, #tpu.memory_space<vmem>>, vector<2048x128xbf16>
    %cst_29 = arith.constant dense<0.000000e+00> : vector<16x128xf32>
    %220 = tpu.matmul %218, %219, %cst_29 {dimension_numbers = #tpu.dot_dimension_numbers<[1], [0], [0], [1], [0, 0, 1, 1], [], []>} : vector<16x2048xbf16>, vector<2048x128xbf16>, vector<16x128xf32> -> vector<16x128xf32>
    %c0_30 = arith.constant 0 : index
    %c0_31 = arith.constant 0 : index
    %221 = vector.load %arg5[%c0_30, %c0_31] : memref<1x128xf32, #tpu.memory_space<vmem>>, vector<1x128xf32>
    %222 = vector.broadcast %221 : vector<1x128xf32> to vector<16x128xf32>
    %223 = arith.addf %220, %222 : vector<16x128xf32>
    %c16_i32 = arith.constant 16 : i32
    %224 = arith.muli %arg0, %c16_i32 : i32
    %225 = tpu.assume_multiple %224, 16 : i32
    %226 = arith.index_cast %225 : i32 to index
    %c0_32 = arith.constant 0 : index
    %227 = vector.load %arg11[%226, %c0_32] : memref<16x128xf32, #tpu.memory_space<vmem>>, vector<16x128xf32>
    tpu.vector_store %arg11[%226, %c0_32], %223 {strides = array<i32>} : memref<16x128xf32, #tpu.memory_space<vmem>>, vector<16x128xf32>,
    %c0_i32 = arith.constant 0 : i32
    %228 = arith.cmpi eq, %arg0, %c0_i32 : i32
    %229 = arith.extui %228 : i1 to i32
    %c0_i32_33 = arith.constant 0 : i32
    %230 = arith.cmpi ne, %229, %c0_i32_33 : i32
    scf.if %230 {
      %c0_34 = arith.constant 0 : index
      %c0_35 = arith.constant 0 : index
      %231 = vector.load %arg11[%c0_34, %c0_35] : memref<16x128xf32, #tpu.memory_space<vmem>>, vector<16x128xf32>
      %c0_36 = arith.constant 0 : index
      %c0_37 = arith.constant 0 : index
      %232 = vector.load %arg6[%c0_36, %c0_37] : memref<128x16xf32, #tpu.memory_space<vmem>>, vector<128x16xf32>
      %cst_38 = arith.constant dense<0.000000e+00> : vector<128x128xf32>
      %233 = tpu.matmul %232, %231, %cst_38 {dimension_numbers = #tpu.dot_dimension_numbers<[1], [0], [0], [1], [0, 0, 1, 1], [], []>} : vector<128x16xf32>, vector<16x128xf32>, vector<128x128xf32> -> vector<128x128xf32>
      %c0_39 = arith.constant 0 : index
      %c0_40 = arith.constant 0 : index
      %234 = vector.load %arg7[%c0_39, %c0_40] : memref<8x16xf32, #tpu.memory_space<vmem>>, vector<8x16xf32>
      %cst_41 = arith.constant dense<0.000000e+00> : vector<8x128xf32>
      %235 = tpu.matmul %234, %231, %cst_41 {dimension_numbers = #tpu.dot_dimension_numbers<[1], [0], [0], [1], [0, 0, 1, 1], [], []>} : vector<8x16xf32>, vector<16x128xf32>, vector<8x128xf32> -> vector<8x128xf32>
      %236 = tpu.transpose %233, [1, 0] : vector<128x128xf32> -> vector<128x128xf32>
      %cst_42 = arith.constant dense<0.000000e+00> : vector<8x128xf32>
      %237 = tpu.matmul %235, %236, %cst_42 {dimension_numbers = #tpu.dot_dimension_numbers<[1], [0], [0], [1], [0, 0, 1, 1], [], []>} : vector<8x128xf32>, vector<128x128xf32>, vector<8x128xf32> -> vector<8x128xf32>
      %238 = arith.mulf %235, %235 : vector<8x128xf32>
      %cst_43 = arith.constant dense<0.000000e+00> : vector<8xf32>
      %239 = vector.multi_reduction <add>, %238, %cst_43 [1] : vector<8x128xf32> to vector<8xf32>
      %240 = vector.shape_cast %239 : vector<8xf32> to vector<8x1xf32>
      %241 = arith.mulf %236, %236 : vector<128x128xf32>
      %cst_44 = arith.constant dense<0.000000e+00> : vector<128xf32>
      %242 = vector.multi_reduction <add>, %241, %cst_44 [0] : vector<128x128xf32> to vector<128xf32>
      %243 = vector.shape_cast %242 : vector<128xf32> to vector<1x128xf32>
      %244 = vector.broadcast %240 : vector<8x1xf32> to vector<8x128xf32>
      %245 = vector.broadcast %243 : vector<1x128xf32> to vector<8x128xf32>
      %246 = arith.addf %244, %245 : vector<8x128xf32>
      %cst_45 = arith.constant 2.000000e+00 : f32
      %247 = vector.broadcast %cst_45 : f32 to vector<8x128xf32>
      %248 = arith.mulf %247, %237 : vector<8x128xf32>
      %249 = arith.subf %246, %248 : vector<8x128xf32>
      %cst_46 = arith.constant 0.000000e+00 : f32
      %250 = vector.broadcast %cst_46 : f32 to vector<8x128xf32>
      %251 = arith.maximumf %249, %250 : vector<8x128xf32>
      %252 = math.sqrt %251 : vector<8x128xf32>
      %253 = tpu.iota {dimensions = array<i32: 1>} : vector<8x128xi32>
      %c4_i32 = arith.constant 4 : i32
      %254 = vector.broadcast %c4_i32 : i32 to vector<8x128xi32>
      %255 = arith.cmpi slt, %253, %254 : vector<8x128xi32>
      %cst_47 = arith.constant 0.000000e+00 : f32
      %256 = vector.broadcast %cst_47 : f32 to vector<8x128xf32>
      %257 = arith.subf %256, %252 : vector<8x128xf32>
      %cst_48 = arith.constant -1.000000e+30 : f32
      %258 = vector.broadcast %cst_48 : f32 to vector<8x128xf32>
      %259 = arith.select %255, %257, %258 : vector<8x128xi1>, vector<8x128xf32>
      %cst_49 = arith.constant dense<0xFF800000> : vector<8xf32>
      %260 = vector.multi_reduction <maximumf>, %259, %cst_49 [1] : vector<8x128xf32> to vector<8xf32>
      %261 = vector.shape_cast %260 : vector<8xf32> to vector<8x1xf32>
      %262 = vector.broadcast %261 : vector<8x1xf32> to vector<8x128xf32>
      %263 = arith.subf %259, %262 : vector<8x128xf32>
      %264 = math.exp %263 : vector<8x128xf32>
      %cst_50 = arith.constant dense<0.000000e+00> : vector<8xf32>
      %265 = vector.multi_reduction <add>, %264, %cst_50 [1] : vector<8x128xf32> to vector<8xf32>
      %266 = vector.shape_cast %265 : vector<8xf32> to vector<8x1xf32>
      %267 = math.log %266 : vector<8x1xf32>
      %268 = arith.addf %261, %267 : vector<8x1xf32>
      %c0_51 = arith.constant 0 : index
      %c0_52 = arith.constant 0 : index
      %269 = vector.load %arg8[%c0_51, %c0_52] : memref<8x128xf32, #tpu.memory_space<vmem>>, vector<8x128xf32>
      %270 = vector.broadcast %268 : vector<8x1xf32> to vector<8x128xf32>
      %271 = arith.subf %259, %270 : vector<8x128xf32>
      %272 = arith.mulf %269, %271 : vector<8x128xf32>
      %cst_53 = arith.constant dense<0.000000e+00> : vector<8xf32>
      %273 = vector.multi_reduction <add>, %272, %cst_53 [1] : vector<8x128xf32> to vector<8xf32>
      %274 = vector.shape_cast %273 : vector<8xf32> to vector<8x1xf32>
      %cst_54 = arith.constant 0.000000e+00 : f32
      %275 = vector.broadcast %cst_54 : f32 to vector<8x1xf32>
      %276 = arith.subf %275, %274 : vector<8x1xf32>
      %cst_55 = arith.constant dense<0.000000e+00> : vector<1xf32>
      %277 = vector.multi_reduction <add>, %276, %cst_55 [0] : vector<8x1xf32> to vector<1xf32>
      %278 = vector.shape_cast %277 : vector<1xf32> to vector<1x1xf32>
      %cst_56 = arith.constant 8.000000e+00 : f32
      %279 = vector.broadcast %cst_56 : f32 to vector<1x1xf32>
      %280 = arith.divf %278, %279 : vector<1x1xf32>
      %c0_57 = arith.constant 0 : index
      %c0_58 = arith.constant 0 : index
      %281 = vector.load %arg9[%c0_57, %c0_58] : memref<1x1xf32, #tpu.memory_space<vmem>>, vector<1x1xf32>
      tpu.vector_store %arg9[%c0_57, %c0_58], %280 {strides = array<i32>} : memref<1x1xf32, #tpu.memory_space<vmem>>, vector<1x1xf32>,
      %c0_59 = arith.constant 0 : index
      %c0_60 = arith.constant 0 : index
      %282 = vector.load %arg10[%c0_59, %c0_60] : memref<8x128xf32, #tpu.memory_space<vmem>>, vector<8x128xf32>
      tpu.vector_store %arg10[%c0_59, %c0_60], %259 {strides = array<i32>} : memref<8x128xf32, #tpu.memory_space<vmem>>, vector<8x128xf32>,
    } else {
    }
    return
  }
  func.func @transform_0(%arg0: i32) -> (i32, i32, i32, i32) {
    %c0_i32 = arith.constant 0 : i32
    %c0_i32_0 = arith.constant 0 : i32
    %c0_i32_1 = arith.constant 0 : i32
    %c0_i32_2 = arith.constant 0 : i32
    return %c0_i32, %c0_i32_0, %arg0, %c0_i32_1 : i32, i32, i32, i32
  }
  func.func @transform_1(%arg0: i32) -> (i32, i32) {
    %c0_i32 = arith.constant 0 : i32
    %c0_i32_0 = arith.constant 0 : i32
    %c0_i32_1 = arith.constant 0 : i32
    return %c0_i32, %c0_i32_0 : i32, i32
  }
  func.func @transform_2(%arg0: i32) -> (i32, i32) {
    %c0_i32 = arith.constant 0 : i32
    %c0_i32_0 = arith.constant 0 : i32
    %c0_i32_1 = arith.constant 0 : i32
    return %c0_i32, %c0_i32_0 : i32, i32
  }
  func.func @transform_3(%arg0: i32) -> (i32, i32) {
    %c0_i32 = arith.constant 0 : i32
    %c0_i32_0 = arith.constant 0 : i32
    %c0_i32_1 = arith.constant 0 : i32
    return %c0_i32, %c0_i32_0 : i32, i32
  }
  func.func @transform_4(%arg0: i32) -> (i32, i32) {
    %c0_i32 = arith.constant 0 : i32
    %c0_i32_0 = arith.constant 0 : i32
    %c0_i32_1 = arith.constant 0 : i32
    return %c0_i32, %c0_i32_0 : i32, i32
  }
  func.func @transform_5(%arg0: i32) -> (i32, i32) {
    %c0_i32 = arith.constant 0 : i32
    %c0_i32_0 = arith.constant 0 : i32
    %c0_i32_1 = arith.constant 0 : i32
    return %c0_i32, %c0_i32_0 : i32, i32
  }
  func.func @transform_6(%arg0: i32) -> (i32, i32) {
    %c0_i32 = arith.constant 0 : i32
    %c0_i32_0 = arith.constant 0 : i32
    %c0_i32_1 = arith.constant 0 : i32
    return %c0_i32, %c0_i32_0 : i32, i32
  }
  func.func @transform_7(%arg0: i32) -> (i32, i32) {
    %c0_i32 = arith.constant 0 : i32
    %c0_i32_0 = arith.constant 0 : i32
    %c0_i32_1 = arith.constant 0 : i32
    return %c0_i32, %c0_i32_0 : i32, i32
  }
  func.func @transform_8(%arg0: i32) -> (i32, i32) {
    %c0_i32 = arith.constant 0 : i32
    %c0_i32_0 = arith.constant 0 : i32
    %c0_i32_1 = arith.constant 0 : i32
    return %c0_i32, %c0_i32_0 : i32, i32
  }
  func.func @transform_9(%arg0: i32) -> (i32, i32) {
    %c0_i32 = arith.constant 0 : i32
    %c0_i32_0 = arith.constant 0 : i32
    %c0_i32_1 = arith.constant 0 : i32
    return %c0_i32, %c0_i32_0 : i32, i32
  }
}

</mosaic_0001>

<bundles_post_ra>
// kernel: eq.33
= control target key start
LH: loop header
LB: loop body
LE: loop exit
PB: predicated region body
PF: predicated region fallthrough
CT: control target
= control target key end

     0   :  { %vm7_vm0 = vcmask 15360   ;;  %s37_s8 = smov 2   ;;  %s38_s9 = smov 4   ;;  %vm13_vm1 = vcmask 64560   ;;  %vm19_vm2 = vcmask 48160   ;;  %vm25_vm3 = vcmask 31760   ;;  %s55_s0 = inlined_call_operand.vmem [shape: s32[4,2], index: 0, kind: input, shape index: {}]   ;;  %s56_s1 = inlined_call_operand.vmem [shape: s32[8], index: 1, kind: output, shape index: {}]  }
   0x1   :  { %v4_v0 = vld [vmem:[%s55_s0] sm:$0xf]  ;;  %s36_s0 = smov 6  }
   0x2   :  { %5 = vst [vmem:[#allocation1] sm:$0xf] %v4_v0 }
   0x9   :  { %v10_v1 = vld [vmem:[#allocation1 + $0x3] sm:$0x1]   ;;  %v22_v2 = vld [vmem:[#allocation1 + $0x1] sm:$0x1]   ;;  %v6_v3 = vld [vmem:[#allocation1] sm:$0x1]  }
   0xa   :  { %11 = vrot.lane.b32.xlu0 %v10_v1, %s36_s0  ;;  %23 = vrot.lane.b32.xlu1 %v22_v2, %s37_s8  ;;  %v16_v4 = vld [vmem:[#allocation1 + $0x2] sm:$0x1]   ;;  %8 = vst.msk [vmem:[#allocation0] sm:$0x1] %vm7_vm0, %v6_v3  }
   0xe   :  { %17 = vrot.lane.b32.xlu0 %v16_v4, %s38_s9 }
  0x7c   :  { %v12_v5 = vpop.permute.xlu0 %11   ;;  %v24_v6 = vpop.permute.xlu1 %23  }
  0x7d   :  { %14 = vst.msk [vmem:[#allocation0] sm:$0x1] %vm13_vm1, %v12_v5  }
  0x80   :  { %v18_v7 = vpop.permute.xlu0 %17  }
  0x81   :  { %20 = vst.msk [vmem:[#allocation0] sm:$0x1] %vm19_vm2, %v18_v7  }
  0x82   :  { %26 = vst.msk [vmem:[#allocation0] sm:$0x1] %vm25_vm3, %v24_v6  }
  0x89   :  { %v30_v8 = vld [vmem:[#allocation0] sm:$0x1] }
  0x8a   :  { %32 = vst [vmem:[%s56_s1] sm:$0x1] %v30_v8 }

// kernel: protonet_forward.1
= control target key start
LH: loop header
LB: loop body
LE: loop exit
PB: predicated region body
PF: predicated region fallthrough
CT: control target
= control target key end

     0   :  { %s5278_s0 = inlined_call_operand.vmem [shape: bf16[8,8,16,128], index: 0, kind: input, shape index: {}]   ;;  %s5279_s1 = inlined_call_operand.vmem [shape: bf16[128,128], index: 1, kind: input, shape index: {}]   ;;  %s5280_s2 = inlined_call_operand.vmem [shape: f32[1,128], index: 2, kind: input, shape index: {}]   ;;  %s5281_s3 = inlined_call_operand.vmem [shape: bf16[2048,128], index: 3, kind: input, shape index: {}]   ;;  %s5282_s4 = inlined_call_operand.vmem [shape: f32[1,128], index: 4, kind: input, shape index: {}]   ;;  %s5283_s5 = inlined_call_operand.vmem [shape: f32[128,16], index: 5, kind: input, shape index: {}]   ;;  %s5284_s6 = inlined_call_operand.vmem [shape: f32[8,16], index: 6, kind: input, shape index: {}]   ;;  %s5285_s7 = inlined_call_operand.vmem [shape: f32[8,128], index: 7, kind: input, shape index: {}]   ;;  %s5286_s8 = inlined_call_operand.hbm [shape: f32[1,1], index: 8, kind: output, shape index: {0}]   ;;  %s5287_s9 = inlined_call_operand.vmem [shape: f32[8,128], index: 9, kind: output, shape index: {1}]  }
   0x1   :  { %v4043_v0 = vld [vmem:[%s5279_s1] sm:$0xff]   ;;  %v4044_v1 = vld [vmem:[%s5279_s1 + $0x8] sm:$0xff]   ;;  %v4045_v2 = vld [vmem:[%s5279_s1 + $0x10] sm:$0xff]  }
   0x2   :  { %3794 = vmatprep.subr.bf16.mxu0 %v4043_v0  ;;  %v4046_v3 = vld [vmem:[%s5279_s1 + $0x18] sm:$0xff]   ;;  %v4051_v4 = vld [vmem:[%s5278_s0] sm:$0xff]   ;;  %v4048_v6 = vld [vmem:[%s5279_s1 + $0x28] sm:$0xff]  }
   0x3   :  { %3795 = vmatpush3.bf16.msra.mxu0 %v4043_v0  ;;  %3810 = vmatprep.mubr.bf16.mxu0 %v4051_v4  ;;  %v4047_v5 = vld [vmem:[%s5279_s1 + $0x20] sm:$0xff]   ;;  %v4049_v7 = vld [vmem:[%s5279_s1 + $0x30] sm:$0xff]   ;;  %v4050_v8 = vld [vmem:[%s5279_s1 + $0x38] sm:$0xff]  }
   0x4   :  { %3796 = vmatprep.subr.bf16.mxu0 %v4044_v1  ;;  %v4052_v9 = vld [vmem:[%s5278_s0 + $0x8] sm:$0xff]   ;;  %v4053_v10 = vld [vmem:[%s5278_s0 + $0x10] sm:$0xff]   ;;  %v4054_v11 = vld [vmem:[%s5278_s0 + $0x18] sm:$0xff]  }
   0x5   :  { %v4055_v12 = vld [vmem:[%s5278_s0 + $0x20] sm:$0xff]   ;;  %v4056_v13 = vld [vmem:[%s5278_s0 + $0x28] sm:$0xff]   ;;  %v4057_v14 = vld [vmem:[%s5278_s0 + $0x30] sm:$0xff]  }
   0x6   :  { %v4058_v15 = vld [vmem:[%s5278_s0 + $0x38] sm:$0xff]   ;;  %v4059_v16 = vld [vmem:[%s5278_s0 + $0x40] sm:$0xff]   ;;  %v4060_v17 = vld [vmem:[%s5278_s0 + $0x48] sm:$0xff]  }
   0x7   :  { %3797 = vmatpush3.bf16.msra.mxu0 %v4044_v1  ;;  %v4061_v18 = vld [vmem:[%s5278_s0 + $0x50] sm:$0xff]   ;;  %v4062_v19 = vld [vmem:[%s5278_s0 + $0x58] sm:$0xff]   ;;  %v4063_v20 = vld [vmem:[%s5278_s0 + $0x60] sm:$0xff]  }
   0x8   :  { %3798 = vmatprep.subr.bf16.mxu0 %v4045_v2  ;;  %v4064_v21 = vld [vmem:[%s5278_s0 + $0x68] sm:$0xff]   ;;  %v4065_v22 = vld [vmem:[%s5278_s0 + $0x70] sm:$0xff]   ;;  %v4066_v23 = vld [vmem:[%s5278_s0 + $0x78] sm:$0xff]  }
   0x9   :  { %v4067_v24 = vld [vmem:[%s5278_s0 + $0x80] sm:$0xff]   ;;  %v4068_v25 = vld [vmem:[%s5278_s0 + $0x88] sm:$0xff]   ;;  %v4069_v26 = vld [vmem:[%s5278_s0 + $0x90] sm:$0xff]  }
   0xa   :  { %v4070_v27 = vld [vmem:[%s5278_s0 + $0x98] sm:$0xff]   ;;  %v4071_v28 = vld [vmem:[%s5278_s0 + $0xa0] sm:$0xff]   ;;  %v4072_v29 = vld [vmem:[%s5278_s0 + $0xa8] sm:$0xff]  }
   0xb   :  { %3799 = vmatpush3.bf16.msra.mxu0 %v4045_v2  ;;  %v4073_v30 = vld [vmem:[%s5278_s0 + $0xb0] sm:$0xff]   ;;  %v4074_v31 = vld [vmem:[%s5278_s0 + $0xb8] sm:$0xff]   ;;  %v4075_v32 = vld [vmem:[%s5278_s0 + $0xc0] sm:$0xff]  }
   0xc   :  { %3800 = vmatprep.subr.bf16.mxu0 %v4046_v3  ;;  %v4076_v33 = vld [vmem:[%s5278_s0 + $0xc8] sm:$0xff]   ;;  %v4077_v34 = vld [vmem:[%s5278_s0 + $0xd0] sm:$0xff]   ;;  %v4078_v35 = vld [vmem:[%s5278_s0 + $0xd8] sm:$0xff]  }
   0xd   :  { %v4079_v36 = vld [vmem:[%s5278_s0 + $0xe0] sm:$0xff]   ;;  %v4080_v39 = vld [vmem:[%s5278_s0 + $0xe8] sm:$0xff]   ;;  %v4081_v42 = vld [vmem:[%s5278_s0 + $0xf0] sm:$0xff]  }
   0xe   :  { %v4111_v37 = vld [vmem:[%s5281_s3 + $0x40] sm:$0xff]   ;;  %v4113_v40 = vld [vmem:[%s5281_s3 + $0x48] sm:$0xff]   ;;  %v4117_v43 = vld [vmem:[%s5281_s3 + $0x50] sm:$0xff]  }
   0xf   :  { %3801 = vmatpush3.bf16.msra.mxu0 %v4046_v3  ;;  %v4112_v38 = vld [vmem:[%s5281_s3] sm:$0xff]   ;;  %3580 = vmatprep.subr.bf16.mxu1 %v4111_v37  ;;  %v4114_v41 = vld [vmem:[%s5281_s3 + $0x8] sm:$0xff]   ;;  %v4118_v44 = vld [vmem:[%s5281_s3 + $0x10] sm:$0xff]  }
  0x10   :  { %3802 = vmatprep.subr.bf16.mxu0 %v4047_v5  ;;  %3581 = vmatpush3.bf16.msra.mxu1 %v4112_v38  ;;  %v4082_v45 = vld [vmem:[%s5278_s0 + $0xf8] sm:$0xff]   ;;  %v4083_v48 = vld [vmem:[%s5278_s0 + $0x100] sm:$0xff]   ;;  %v4084_v51 = vld [vmem:[%s5278_s0 + $0x108] sm:$0xff]  }
  0x11   :  { %3582 = vmatprep.subr.bf16.mxu1 %v4113_v40  ;;  %v4119_v46 = vld [vmem:[%s5281_s3 + $0x58] sm:$0xff]   ;;  %v4123_v49 = vld [vmem:[%s5281_s3 + $0x60] sm:$0xff]   ;;  %v4085_v52 = vld [vmem:[%s5278_s0 + $0x110] sm:$0xff]  }
  0x12   :  { %v4120_v47 = vld [vmem:[%s5281_s3 + $0x18] sm:$0xff]   ;;  %v4124_v50 = vld [vmem:[%s5281_s3 + $0x20] sm:$0xff]   ;;  %v4125_v53 = vld [vmem:[%s5281_s3 + $0x68] sm:$0xff]  }
  0x13   :  { %3803 = vmatpush3.bf16.msra.mxu0 %v4047_v5  ;;  %v4126_v54 = vld [vmem:[%s5281_s3 + $0x28] sm:$0xff]   ;;  %v4127_v55 = vld [vmem:[%s5281_s3 + $0x70] sm:$0xff]  }
  0x14   :  { %3804 = vmatprep.subr.bf16.mxu0 %v4048_v6  ;;  %3583 = vmatpush3.bf16.msra.mxu1 %v4114_v41  ;;  %v4128_v56 = vld [vmem:[%s5281_s3 + $0x30] sm:$0xff]  }
  0x15   :  { %3584 = vmatprep.subr.bf16.mxu1 %v4117_v43 }
  0x17   :  { %3805 = vmatpush3.bf16.msra.mxu0 %v4048_v6 }
  0x18   :  { %3806 = vmatprep.subr.bf16.mxu0 %v4049_v7  ;;  %3585 = vmatpush3.bf16.msra.mxu1 %v4118_v44 }
  0x19   :  { %3586 = vmatprep.subr.bf16.mxu1 %v4119_v46 }
  0x1b   :  { %3807 = vmatpush3.bf16.msra.mxu0 %v4049_v7 }
  0x1c   :  { %3808 = vmatprep.subr.bf16.mxu0 %v4050_v8  ;;  %3587 = vmatpush3.bf16.msra.mxu1 %v4120_v47 }
  0x1d   :  { %3588 = vmatprep.subr.bf16.mxu1 %v4123_v49 }
  0x1f   :  { %3809 = vmatpush3.bf16.msra.mxu0 %v4050_v8 }
  0x20   :  { %3589 = vmatpush3.bf16.msra.mxu1 %v4124_v50 }
  0x21   :  { %3590 = vmatprep.subr.bf16.mxu1 %v4125_v53 }
  0x22   :  { %3811 = vmatmul.mubr.bf16.vlgmr.msra.gmra.mrb[0].mxu0 %v4052_v9 }
  0x23   :  { %3814 = vmatprep.mubr.bf16.mxu0 %v4053_v10 }
  0x24   :  { %3591 = vmatpush3.bf16.msra.mxu1 %v4126_v54 }
  0x2a   :  { %3815 = vmatmul.mubr.bf16.gmra.mrb[4].mxu0 %v4054_v11 }
  0x2b   :  { %3818 = vmatprep.mubr.bf16.mxu0 %v4055_v12 }
  0x32   :  { %3819 = vmatmul.mubr.bf16.gmra.mrb[8].mxu0 %v4056_v13 }
  0x33   :  { %3822 = vmatprep.mubr.bf16.mxu0 %v4057_v14 }
  0x3a   :  { %3823 = vmatmul.mubr.bf16.gmra.mrb[12].mxu0 %v4058_v15 }
  0x3b   :  { %3826 = vmatprep.mubr.bf16.mxu0 %v4059_v16 }
  0x42   :  { %3827 = vmatmul.mubr.bf16.gmra.mrb[16].mxu0 %v4060_v17 }
  0x43   :  { %3830 = vmatprep.mubr.bf16.mxu0 %v4061_v18 }
  0x4a   :  { %3831 = vmatmul.mubr.bf16.gmra.mrb[20].mxu0 %v4062_v19 }
  0x4b   :  { %3834 = vmatprep.mubr.bf16.mxu0 %v4063_v20 }
  0x52   :  { %3835 = vmatmul.mubr.bf16.gmra.mrb[24].mxu0 %v4064_v21 }
  0x53   :  { %3838 = vmatprep.mubr.bf16.mxu0 %v4065_v22 }
  0x5a   :  { %3839 = vmatmul.mubr.bf16.gmra.mrb[28].mxu0 %v4066_v23 }
  0x5b   :  { %3842 = vmatprep.mubr.bf16.mxu0 %v4067_v24 }
  0x62   :  { %3843 = vmatmul.mubr.bf16.gmra.mrb[32].mxu0 %v4068_v25 }
  0x63   :  { %3846 = vmatprep.mubr.bf16.mxu0 %v4069_v26 }
  0x6a   :  { %3847 = vmatmul.mubr.bf16.gmra.mrb[36].mxu0 %v4070_v27 }
  0x6b   :  { %3850 = vmatprep.mubr.bf16.mxu0 %v4071_v28 }
  0x72   :  { %3851 = vmatmul.mubr.bf16.gmra.mrb[40].mxu0 %v4072_v29 }
  0x73   :  { %3854 = vmatprep.mubr.bf16.mxu0 %v4073_v30 }
  0x7a   :  { %3855 = vmatmul.mubr.bf16.gmra.mrb[44].mxu0 %v4074_v31 }
  0x7b   :  { %3858 = vmatprep.mubr.bf16.mxu0 %v4075_v32 }
  0x82   :  { %3859 = vmatmul.mubr.bf16.gmra.mrb[48].mxu0 %v4076_v33 }
  0x83   :  { %3862 = vmatprep.mubr.bf16.mxu0 %v4077_v34 }
  0x8a   :  { %3863 = vmatmul.mubr.bf16.gmra.mrb[52].mxu0 %v4078_v35 }
  0x8b   :  { %3866 = vmatprep.mubr.bf16.mxu0 %v4079_v36 }
  0x92   :  { %3867 = vmatmul.mubr.bf16.gmra.mrb[56].mxu0 %v4080_v39 }
  0x93   :  { %3870 = vmatprep.mubr.bf16.mxu0 %v4081_v42 }
  0x9a   :  { %3871 = vmatmul.mubr.bf16.gmra.mrb[60].mxu0 %v4082_v45 }
  0x9b   :  { %3874 = vmatprep.mubr.bf16.mxu0 %v4083_v48 }
  0xa2   :  { %3875 = vmatmul.mubr.bf16.gmra.mrb[64].mxu0 %v4084_v51 }
  0xa3   :  { %15 = vsyncpa [#allocation5], 0  ;;  %3878 = vmatprep.mubr.bf16.mxu0 %v4085_v52  ;;  %3592 = vmatprep.subr.bf16.mxu1 %v4127_v55  ;;  %v4129_v57 = vld [vmem:[%s5281_s3 + $0x78] sm:$0xff]   ;;  %v4087_v60 = vld [vmem:[%s5278_s0 + $0x120] sm:$0xff]   ;;  %vm2818_vm0 = vcmask 130048   ;;  %vm4275_vm1 = vmmov 0  }
  0xa4   :  { %3593 = vmatpush3.bf16.msra.mxu1 %v4128_v56  ;;  %v4086_v58 = vld [vmem:[%s5278_s0 + $0x118] sm:$0xff]   ;;  %v4131_v61 = vld [vmem:[%s5281_s3 + $0xc0] sm:$0xff]   ;;  %v4088_v62 = vld [vmem:[%s5278_s0 + $0x128] sm:$0xff]   ;;  %vm3268_vm5 = vcmask 0  }
  0xa5   :  { %v4130_v59 = vld [vmem:[%s5281_s3 + $0x38] sm:$0xff]   ;;  %3594 = vmatprep.subr.bf16.mxu1 %v4129_v57  ;;  %v4089_v63 = vld [vmem:[%s5278_s0 + $0x130] sm:$0xff]   ;;  %v4091_v1 = vld [vmem:[%s5278_s0 + $0x140] sm:$0xff]  }
  0xa6   :  { %v4090_v0 = vld [vmem:[%s5278_s0 + $0x138] sm:$0xff]   ;;  %v4092_v2 = vld [vmem:[%s5278_s0 + $0x148] sm:$0xff]   ;;  %v4093_v3 = vld [vmem:[%s5278_s0 + $0x150] sm:$0xff]  }
  0xa7   :  { %v4094_v4 = vld [vmem:[%s5278_s0 + $0x158] sm:$0xff]   ;;  %v4095_v5 = vld [vmem:[%s5278_s0 + $0x160] sm:$0xff]   ;;  %v4096_v6 = vld [vmem:[%s5278_s0 + $0x168] sm:$0xff]  }
  0xa8   :  { %3595 = vmatpush3.bf16.msra.mxu1 %v4130_v59  ;;  %v4097_v7 = vld [vmem:[%s5278_s0 + $0x170] sm:$0xff]   ;;  %v4098_v8 = vld [vmem:[%s5278_s0 + $0x178] sm:$0xff]   ;;  %v4099_v9 = vld [vmem:[%s5278_s0 + $0x180] sm:$0xff]  }
  0xa9   :  { %3602 = vmatprep.subr.bf16.mxu1 %v4131_v61  ;;  %v4100_v10 = vld [vmem:[%s5278_s0 + $0x188] sm:$0xff]   ;;  %v4101_v11 = vld [vmem:[%s5278_s0 + $0x190] sm:$0xff]   ;;  %v4102_v12 = vld [vmem:[%s5278_s0 + $0x198] sm:$0xff]  }
  0xaa   :  { %3879 = vmatmul.mubr.bf16.gmra.mrb[68].mxu0 %v4086_v58  ;;  %v4103_v13 = vld [vmem:[%s5278_s0 + $0x1a0] sm:$0xff]   ;;  %v4104_v14 = vld [vmem:[%s5278_s0 + $0x1a8] sm:$0xff]   ;;  %v4105_v15 = vld [vmem:[%s5278_s0 + $0x1b0] sm:$0xff]  }
  0xab   :  { %3882 = vmatprep.mubr.bf16.mxu0 %v4087_v60  ;;  %v4571_v16 = vld [vmem:[%s5280_s2] ss:$0 sm:$0xff]  ;;  %v4106_v20 = vld [vmem:[%s5278_s0 + $0x1b8] sm:$0xff]   ;;  %v4108_v36 = vld [vmem:[%s5278_s0 + $0x1c8] sm:$0xff]  }
  0xac   :  { %v4107_v23 = vld [vmem:[%s5278_s0 + $0x1c0] sm:$0xff]   ;;  %v4109_v39 = vld [vmem:[%s5278_s0 + $0x1d0] sm:$0xff]   ;;  %v4110_v52 = vld [vmem:[%s5278_s0 + $0x1d8] sm:$0xff]  }
  0xad   :  { %v4115_v55 = vld [vmem:[%s5278_s0 + $0x1e0] sm:$0xff]  }
  0xb2   :  { %3883 = vmatmul.mubr.bf16.gmra.mrb[72].mxu0 %v4088_v62 }
  0xb3   :  { %3886 = vmatprep.mubr.bf16.mxu0 %v4089_v63 }
  0xba   :  { %3887 = vmatmul.mubr.bf16.gmra.mrb[76].mxu0 %v4090_v0 }
  0xbb   :  { %3890 = vmatprep.mubr.bf16.mxu0 %v4091_v1 }
  0xc2   :  { %3891 = vmatmul.mubr.bf16.gmra.mrb[80].mxu0 %v4092_v2 }
  0xc3   :  { %3894 = vmatprep.mubr.bf16.mxu0 %v4093_v3 }
  0xca   :  { %3895 = vmatmul.mubr.bf16.gmra.mrb[84].mxu0 %v4094_v4  ;;  %v4116_v4 = vld [vmem:[%s5278_s0 + $0x1e8] sm:$0xff]  }
  0xcb   :  { %3898 = vmatprep.mubr.bf16.mxu0 %v4095_v5 }
  0xd2   :  { %3899 = vmatmul.mubr.bf16.gmra.mrb[88].mxu0 %v4096_v6 }
  0xd3   :  { %3902 = vmatprep.mubr.bf16.mxu0 %v4097_v7  ;;  %v4121_v7 = vld [vmem:[%s5278_s0 + $0x1f0] sm:$0xff]  }
  0xda   :  { %3903 = vmatmul.mubr.bf16.gmra.mrb[92].mxu0 %v4098_v8 }
  0xdb   :  { %3906 = vmatprep.mubr.bf16.mxu0 %v4099_v9 }
  0xe2   :  { %3907 = vmatmul.mubr.bf16.gmra.mrb[96].mxu0 %v4100_v10 }
  0xe3   :  { %3910 = vmatprep.mubr.bf16.mxu0 %v4101_v11 }
  0xea   :  { %3911 = vmatmul.mubr.bf16.gmra.mrb[100].mxu0 %v4102_v12 }
  0xeb   :  { %3914 = vmatprep.mubr.bf16.mxu0 %v4103_v13 }
  0xf2   :  { %3915 = vmatmul.mubr.bf16.gmra.mrb[104].mxu0 %v4104_v14 }
  0xf3   :  { %3918 = vmatprep.mubr.bf16.mxu0 %v4105_v15 }
  0xf5   :  { %v3812_v17 = vpop.f32.mrb[0].mxu0 }
  0xf6   :  { %v659_v18 = vadd.f32 %v3812_v17, %v4571_v16  ;;  %v650_v19 = vpop.f32.mrb[1].mxu0 }
  0xf7   :  { %v651_v21 = vadd.f32 %v4571_v16, %v650_v19  ;;  %v3813_v22 = vpop.f32.mrb[2].mxu0 }
  0xf8   :  { %v1163_v24 = vmax.f32 %v659_v18, 0.0  ;;  %v662_v25 = vadd.f32 %v3813_v22, %v4571_v16  ;;  %v653_v26 = vpop.f32.mrb[3].mxu0 }
  0xf9   :  { %v1161_v27 = vmax.f32 %v651_v21, 0.0  ;;  %v654_v28 = vadd.f32 %v4571_v16, %v653_v26  ;;  %v4122_v21 = vld [vmem:[%s5278_s0 + $0x1f8] sm:$0xff]  }
  0xfa   :  { %v1164_v29 = vmax.f32 %v662_v25, 0.0  ;;  %3919 = vmatmul.mubr.bf16.gmra.mrb[108].mxu0 %v4106_v20 }
  0xfb   :  { %v4583_v30 = vmax.f32 %v1161_v27, %v1163_v24  ;;  %v1162_v31 = vmax.f32 %v654_v28, 0.0  ;;  %3922 = vmatprep.mubr.bf16.mxu0 %v4107_v23 }
  0xfd   :  { %v4585_v32 = vmax.f32 %v1162_v31, %v1164_v29  ;;  %v3816_v33 = vpop.f32.mrb[4].mxu0 }
  0xfe   :  { %v675_v34 = vadd.f32 %v3816_v33, %v4571_v16  ;;  %v666_v35 = vpop.f32.mrb[5].mxu0 }
  0xff   :  { %v667_v37 = vadd.f32 %v4571_v16, %v666_v35  ;;  %v3817_v38 = vpop.f32.mrb[6].mxu0 }
 0x100   :  { %v1167_v40 = vmax.f32 %v675_v34, 0.0  ;;  %v678_v41 = vadd.f32 %v3817_v38, %v4571_v16  ;;  %v669_v42 = vpop.f32.mrb[7].mxu0 }
 0x101   :  { %v1165_v43 = vmax.f32 %v667_v37, 0.0  ;;  %v670_v44 = vadd.f32 %v4571_v16, %v669_v42 }
 0x102   :  { %v1168_v45 = vmax.f32 %v678_v41, 0.0  ;;  %3923 = vmatmul.mubr.bf16.gmra.mrb[112].mxu0 %v4108_v36 }
 0x103   :  { %v4597_v46 = vmax.f32 %v1165_v43, %v1167_v40  ;;  %v1166_v47 = vmax.f32 %v670_v44, 0.0  ;;  %3926 = vmatprep.mubr.bf16.mxu0 %v4109_v39 }
 0x105   :  { %v4599_v48 = vmax.f32 %v1166_v47, %v1168_v45  ;;  %v3820_v49 = vpop.f32.mrb[8].mxu0 }
 0x106   :  { %v691_v50 = vadd.f32 %v3820_v49, %v4571_v16  ;;  %v682_v51 = vpop.f32.mrb[9].mxu0 }
 0x107   :  { %v683_v53 = vadd.f32 %v4571_v16, %v682_v51  ;;  %v3821_v54 = vpop.f32.mrb[10].mxu0 }
 0x108   :  { %v1171_v56 = vmax.f32 %v691_v50, 0.0  ;;  %v694_v57 = vadd.f32 %v3821_v54, %v4571_v16  ;;  %v685_v58 = vpop.f32.mrb[11].mxu0 }
 0x109   :  { %v1169_v59 = vmax.f32 %v683_v53, 0.0  ;;  %v686_v60 = vadd.f32 %v4571_v16, %v685_v58 }
 0x10a   :  { %v1172_v61 = vmax.f32 %v694_v57, 0.0  ;;  %3927 = vmatmul.mubr.bf16.gmra.mrb[116].mxu0 %v4110_v52 }
 0x10b   :  { %v4611_v62 = vmax.f32 %v1169_v59, %v1171_v56  ;;  %v1170_v63 = vmax.f32 %v686_v60, 0.0  ;;  %3930 = vmatprep.mubr.bf16.mxu0 %v4115_v55 }
 0x10d   :  { %v4613_v0 = vmax.f32 %v1170_v63, %v1172_v61  ;;  %v3824_v1 = vpop.f32.mrb[12].mxu0 }
 0x10e   :  { %v707_v2 = vadd.f32 %v3824_v1, %v4571_v16  ;;  %v698_v3 = vpop.f32.mrb[13].mxu0 }
 0x10f   :  { %v699_v5 = vadd.f32 %v4571_v16, %v698_v3  ;;  %v3825_v6 = vpop.f32.mrb[14].mxu0 }
 0x110   :  { %v1175_v8 = vmax.f32 %v707_v2, 0.0  ;;  %v710_v9 = vadd.f32 %v3825_v6, %v4571_v16  ;;  %v701_v10 = vpop.f32.mrb[15].mxu0 }
 0x111   :  { %v1173_v11 = vmax.f32 %v699_v5, 0.0  ;;  %v702_v12 = vadd.f32 %v4571_v16, %v701_v10 }
 0x112   :  { %v1176_v13 = vmax.f32 %v710_v9, 0.0  ;;  %3931 = vmatmul.mubr.bf16.gmra.mrb[120].mxu0 %v4116_v4  ;;  %v4133_v4 = vld [vmem:[%s5281_s3 + $0xc8] sm:$0xff]  }
 0x113   :  { %v4625_v14 = vmax.f32 %v1173_v11, %v1175_v8  ;;  %v1174_v15 = vmax.f32 %v702_v12, 0.0  ;;  %3934 = vmatprep.mubr.bf16.mxu0 %v4121_v7  ;;  %v4134_v9 = vld [vmem:[%s5281_s3 + $0x88] sm:$0xff]   ;;  %v4135_v12 = vld [vmem:[%s5281_s3 + $0xd0] sm:$0xff]  }
 0x115   :  { %v4627_v17 = vmax.f32 %v1174_v15, %v1176_v13  ;;  %v3828_v18 = vpop.f32.mrb[16].mxu0 }
 0x116   :  { %v723_v19 = vadd.f32 %v3828_v18, %v4571_v16  ;;  %v714_v20 = vpop.f32.mrb[17].mxu0 }
 0x117   :  { %v715_v22 = vadd.f32 %v4571_v16, %v714_v20  ;;  %v3829_v23 = vpop.f32.mrb[18].mxu0 }
 0x118   :  { %v1179_v24 = vmax.f32 %v723_v19, 0.0  ;;  %v726_v25 = vadd.f32 %v3829_v23, %v4571_v16  ;;  %v717_v26 = vpop.f32.mrb[19].mxu0 }
 0x119   :  { %v1177_v27 = vmax.f32 %v715_v22, 0.0  ;;  %v718_v28 = vadd.f32 %v4571_v16, %v717_v26 }
 0x11a   :  { %v1180_v29 = vmax.f32 %v726_v25, 0.0  ;;  %3935 = vmatmul.mubr.bf16.gmra.mrb[124].mxu0 %v4122_v21 }
 0x11b   :  { %v1291_v31 = vmax.f32 %v1177_v27, %v1179_v24  ;;  %v1178_v33 = vmax.f32 %v718_v28, 0.0  ;;  %v4136_v24 = vld [vmem:[%s5281_s3 + $0x90] sm:$0xff]  }
 0x11d   :  { %v1293_v34 = vmax.f32 %v4583_v30, %v1291_v31  ;;  %v1292_v35 = vmax.f32 %v1178_v33, %v1180_v29  ;;  %v3832_v36 = vpop.f32.mrb[20].mxu0  ;;  %v4138_v33 = vld [vmem:[%s5281_s3 + $0x98] sm:$0xff]  }
 0x11e   :  { %v739_v37 = vadd.f32 %v3832_v36, %v4571_v16  ;;  %v730_v38 = vpop.f32.mrb[21].mxu0  ;;  %v4139_v36 = vld [vmem:[%s5281_s3 + $0xe0] sm:$0xff]  }
 0x11f   :  { %v1294_v39 = vmax.f32 %v4585_v32, %v1292_v35  ;;  %v731_v40 = vadd.f32 %v4571_v16, %v730_v38  ;;  %v3833_v41 = vpop.f32.mrb[22].mxu0 }
 0x120   :  { %v1183_v42 = vmax.f32 %v739_v37, 0.0  ;;  %v742_v43 = vadd.f32 %v3833_v41, %v4571_v16  ;;  %v733_v44 = vpop.f32.mrb[23].mxu0 }
 0x121   :  { %v1181_v45 = vmax.f32 %v731_v40, 0.0  ;;  %v734_v47 = vadd.f32 %v4571_v16, %v733_v44  ;;  %v1295_v49 = vpack.c.bf16 %v1294_v39, %v1293_v34 }
 0x122   :  { %v1184_v50 = vmax.f32 %v742_v43, 0.0 }
 0x123   :  { %v1299_v30 = vmax.f32 %v1181_v45, %v1183_v42  ;;  %v1182_v51 = vmax.f32 %v734_v47, 0.0  ;;  %v4140_v45 = vld [vmem:[%s5281_s3 + $0xa0] sm:$0xff]  }
 0x125   :  { %v1300_v52 = vmax.f32 %v1182_v51, %v1184_v50  ;;  %v3836_v53 = vpop.f32.mrb[24].mxu0  ;;  %v1301_v54 = vmax.f32 %v4597_v46, %v1299_v30  ;;  %v4132_v46 = vld [vmem:[%s5281_s3 + $0x80] sm:$0xff]  }
 0x126   :  { %v755_v32 = vadd.f32 %v3836_v53, %v4571_v16  ;;  %v746_v55 = vpop.f32.mrb[25].mxu0 }
 0x127   :  { %v747_v56 = vadd.f32 %v4571_v16, %v746_v55  ;;  %v3837_v57 = vpop.f32.mrb[26].mxu0  ;;  %v1302_v58 = vmax.f32 %v4599_v48, %v1300_v52  ;;  %v4142_v52 = vld [vmem:[%s5281_s3 + $0xa8] sm:$0xff]  }
 0x128   :  { %v1187_v59 = vmax.f32 %v755_v32, 0.0  ;;  %v758_v60 = vadd.f32 %v3837_v57, %v4571_v16  ;;  %v749_v61 = vpop.f32.mrb[27].mxu0  ;;  %v4143_v32 = vld [vmem:[%s5281_s3 + $0xf0] sm:$0xff]  }
 0x129   :  { %v1185_v63 = vmax.f32 %v747_v56, 0.0  ;;  %v750_v1 = vadd.f32 %v4571_v16, %v749_v61  ;;  %v1303_v2 = vpack.c.bf16 %v1302_v58, %v1301_v54 }
 0x12a   :  { %v1188_v3 = vmax.f32 %v758_v60, 0.0 }
 0x12b   :  { %v1307_v5 = vmax.f32 %v1185_v63, %v1187_v59  ;;  %v1186_v6 = vmax.f32 %v750_v1, 0.0  ;;  %2496 = vmatprep.mubr.bf16.mxu1 %v1303_v2  ;;  %v4144_v63 = vld [vmem:[%s5281_s3 + $0xb0] sm:$0xff]   ;;  %v4145_v2 = vld [vmem:[%s5281_s3 + $0xf8] sm:$0xff]  }
 0x12c   :  { %2497 = vmatmul.mubr.bf16.vlgmr.msra.gmra.mrb[0].mxu1 %v1295_v49 }
 0x12d   :  { %v1309_v48 = vmax.f32 %v4611_v62, %v1307_v5  ;;  %v1308_v7 = vmax.f32 %v1186_v6, %v1188_v3  ;;  %3603 = vmatpush3.bf16.msra.mxu1 %v4132_v46  ;;  %v3840_v8 = vpop.f32.mrb[28].mxu0  ;;  %v4146_v6 = vld [vmem:[%s5281_s3 + $0xb8] sm:$0xff]  }
 0x12e   :  { %v771_v10 = vadd.f32 %v3840_v8, %v4571_v16  ;;  %v762_v11 = vpop.f32.mrb[29].mxu0  ;;  %3604 = vmatprep.subr.bf16.mxu1 %v4133_v4  ;;  %v4147_v8 = vld [vmem:[%s5281_s3 + $0x140] sm:$0xff]  }
 0x12f   :  { %v1310_v13 = vmax.f32 %v4613_v0, %v1308_v7  ;;  %v763_v15 = vadd.f32 %v4571_v16, %v762_v11  ;;  %v3841_v62 = vpop.f32.mrb[30].mxu0  ;;  %v4137_v0 = vld [vmem:[%s5281_s3 + $0xd8] sm:$0xff]  }
 0x130   :  { %v1191_v18 = vmax.f32 %v771_v10, 0.0  ;;  %v774_v19 = vadd.f32 %v3841_v62, %v4571_v16  ;;  %v765_v20 = vpop.f32.mrb[31].mxu0 }
 0x131   :  { %v4665_v21 = vpack.c.bf16 %v1310_v13, %v1309_v48  ;;  %v1189_v22 = vmax.f32 %v763_v15, 0.0  ;;  %v766_v23 = vadd.f32 %v4571_v16, %v765_v20  ;;  %3605 = vmatpush3.bf16.msra.mxu1 %v4134_v9  ;;  %v4149_v20 = vld [vmem:[%s5281_s3 + $0x148] sm:$0xff]  }
 0x132   :  { %v1192_v25 = vmax.f32 %v774_v19, 0.0  ;;  %3606 = vmatprep.subr.bf16.mxu1 %v4135_v12 }
 0x133   :  { %v1315_v26 = vmax.f32 %v1189_v22, %v1191_v18  ;;  %v1190_v27 = vmax.f32 %v766_v23, 0.0  ;;  %v4148_v18 = vld [vmem:[%s5281_s3 + $0x100] sm:$0xff]  }
 0x135   :  { %v1317_v28 = vmax.f32 %v4625_v14, %v1315_v26  ;;  %v1316_v29 = vmax.f32 %v1190_v27, %v1192_v25  ;;  %3607 = vmatpush3.bf16.msra.mxu1 %v4136_v24  ;;  %v3844_v31 = vpop.f32.mrb[32].mxu0 }
 0x136   :  { %v787_v34 = vadd.f32 %v3844_v31, %v4571_v16  ;;  %v778_v35 = vpop.f32.mrb[33].mxu0  ;;  %3608 = vmatprep.subr.bf16.mxu1 %v4137_v0  ;;  %v4150_v0 = vld [vmem:[%s5281_s3 + $0x108] sm:$0xff]  }
 0x137   :  { %v1318_v37 = vmax.f32 %v4627_v17, %v1316_v29  ;;  %v779_v38 = vadd.f32 %v4571_v16, %v778_v35  ;;  %v3845_v14 = vpop.f32.mrb[34].mxu0  ;;  %v4141_v17 = vld [vmem:[%s5281_s3 + $0xe8] sm:$0xff]  }
 0x138   :  { %v1195_v39 = vmax.f32 %v787_v34, 0.0  ;;  %v790_v40 = vadd.f32 %v3845_v14, %v4571_v16  ;;  %v781_v41 = vpop.f32.mrb[35].mxu0  ;;  %v4153_v14 = vld [vmem:[%s5281_s3 + $0x158] sm:$0xff]  }
 0x139   :  { %v1193_v42 = vmax.f32 %v779_v38, 0.0  ;;  %v782_v43 = vadd.f32 %v4571_v16, %v781_v41  ;;  %3609 = vmatpush3.bf16.msra.mxu1 %v4138_v33  ;;  %v1319_v44 = vpack.c.bf16 %v1318_v37, %v1317_v28  ;;  %v4151_v28 = vld [vmem:[%s5281_s3 + $0x150] sm:$0xff]  }
 0x13a   :  { %v1196_v47 = vmax.f32 %v790_v40, 0.0  ;;  %3610 = vmatprep.subr.bf16.mxu1 %v4139_v36  ;;  %v4152_v37 = vld [vmem:[%s5281_s3 + $0x110] sm:$0xff]  }
 0x13b   :  { %v4692_v49 = vmax.f32 %v1193_v42, %v1195_v39  ;;  %v1194_v50 = vmax.f32 %v782_v43, 0.0  ;;  %2537 = vmatprep.mubr.bf16.mxu1 %v1319_v44  ;;  %v4154_v43 = vld [vmem:[%s5281_s3 + $0x118] sm:$0xff]  }
 0x13d   :  { %v4694_v30 = vmax.f32 %v1194_v50, %v1196_v47  ;;  %3611 = vmatpush3.bf16.msra.mxu1 %v4140_v45  ;;  %v3848_v51 = vpop.f32.mrb[36].mxu0  ;;  %v4155_v47 = vld [vmem:[%s5281_s3 + $0x160] sm:$0xff]  }
 0x13e   :  { %v803_v53 = vadd.f32 %v3848_v51, %v4571_v16  ;;  %v794_v54 = vpop.f32.mrb[37].mxu0  ;;  %3612 = vmatprep.subr.bf16.mxu1 %v4141_v17 }
 0x13f   :  { %v795_v55 = vadd.f32 %v4571_v16, %v794_v54  ;;  %v3849_v56 = vpop.f32.mrb[38].mxu0 }
 0x140   :  { %v1199_v57 = vmax.f32 %v803_v53, 0.0  ;;  %v806_v58 = vadd.f32 %v3849_v56, %v4571_v16  ;;  %v797_v59 = vpop.f32.mrb[39].mxu0 }
 0x141   :  { %v1197_v60 = vmax.f32 %v795_v55, 0.0  ;;  %v798_v61 = vadd.f32 %v4571_v16, %v797_v59  ;;  %3613 = vmatpush3.bf16.msra.mxu1 %v4142_v52  ;;  %v4156_v55 = vld [vmem:[%s5281_s3 + $0x120] sm:$0xff]  }
 0x142   :  { %v1200_v1 = vmax.f32 %v806_v58, 0.0  ;;  %3614 = vmatprep.subr.bf16.mxu1 %v4143_v32 }
 0x143   :  { %v4712_v46 = vmax.f32 %v1197_v60, %v1199_v57  ;;  %v1198_v3 = vmax.f32 %v798_v61, 0.0  ;;  %v4157_v57 = vld [vmem:[%s5281_s3 + $0x168] sm:$0xff]  }
 0x145   :  { %v4714_v4 = vmax.f32 %v1198_v3, %v1200_v1  ;;  %3615 = vmatpush3.bf16.msra.mxu1 %v4144_v63  ;;  %v3852_v5 = vpop.f32.mrb[40].mxu0  ;;  %v4158_v1 = vld [vmem:[%s5281_s3 + $0x128] sm:$0xff]  }
 0x146   :  { %v819_v48 = vadd.f32 %v3852_v5, %v4571_v16  ;;  %v810_v7 = vpop.f32.mrb[41].mxu0  ;;  %3616 = vmatprep.subr.bf16.mxu1 %v4145_v2  ;;  %v4159_v5 = vld [vmem:[%s5281_s3 + $0x170] sm:$0xff]  }
 0x147   :  { %v811_v9 = vadd.f32 %v4571_v16, %v810_v7  ;;  %v3853_v10 = vpop.f32.mrb[42].mxu0 }
 0x148   :  { %v1203_v11 = vmax.f32 %v819_v48, 0.0  ;;  %v822_v12 = vadd.f32 %v3853_v10, %v4571_v16  ;;  %v813_v13 = vpop.f32.mrb[43].mxu0 }
 0x149   :  { %v1201_v15 = vmax.f32 %v811_v9, 0.0  ;;  %v814_v62 = vadd.f32 %v4571_v16, %v813_v13  ;;  %3617 = vmatpush3.bf16.msra.mxu1 %v4146_v6  ;;  %v4160_v13 = vld [vmem:[%s5281_s3 + $0x130] sm:$0xff]  }
 0x14a   :  { %v1204_v19 = vmax.f32 %v822_v12, 0.0  ;;  %3624 = vmatprep.subr.bf16.mxu1 %v4147_v8 }
 0x14b   :  { %v4732_v22 = vmax.f32 %v1201_v15, %v1203_v11  ;;  %v1202_v23 = vmax.f32 %v814_v62, 0.0 }
 0x14c   :  { %2538 = vmatmul.mubr.bf16.vlgmr.msra.gmra.mrb[4].mxu1 %v4665_v21 }
 0x14d   :  { %v4735_v24 = vmax.f32 %v1202_v23, %v1204_v19  ;;  %3625 = vmatpush3.bf16.msra.mxu1 %v4148_v18  ;;  %v3856_v25 = vpop.f32.mrb[44].mxu0 }
 0x14e   :  { %v835_v26 = vadd.f32 %v3856_v25, %v4571_v16  ;;  %v826_v27 = vpop.f32.mrb[45].mxu0  ;;  %3626 = vmatprep.subr.bf16.mxu1 %v4149_v20  ;;  %v4162_v25 = vld [vmem:[%s5281_s3 + $0x138] sm:$0xff]  }
 0x14f   :  { %v827_v29 = vadd.f32 %v4571_v16, %v826_v27  ;;  %v3857_v31 = vpop.f32.mrb[46].mxu0  ;;  %v4163_v27 = vld [vmem:[%s5281_s3 + $0x1c0] sm:$0xff]  }
 0x150   :  { %v1207_v21 = vmax.f32 %v835_v26, 0.0  ;;  %v838_v33 = vadd.f32 %v3857_v31, %v4571_v16  ;;  %v829_v34 = vpop.f32.mrb[47].mxu0 }
 0x151   :  { %v1205_v35 = vmax.f32 %v827_v29, 0.0  ;;  %v830_v36 = vadd.f32 %v4571_v16, %v829_v34  ;;  %3627 = vmatpush3.bf16.msra.mxu1 %v4150_v0 }
 0x152   :  { %v1208_v38 = vmax.f32 %v838_v33, 0.0  ;;  %3628 = vmatprep.subr.bf16.mxu1 %v4151_v28 }
 0x153   :  { %v4753_v39 = vmax.f32 %v1205_v35, %v1207_v21  ;;  %v1206_v40 = vmax.f32 %v830_v36, 0.0 }
 0x155   :  { %v4755_v41 = vmax.f32 %v1206_v40, %v1208_v38  ;;  %3629 = vmatpush3.bf16.msra.mxu1 %v4152_v37  ;;  %v3860_v42 = vpop.f32.mrb[48].mxu0  ;;  %v4164_v37 = vld [vmem:[%s5281_s3 + $0x180] sm:$0xff]  }
 0x156   :  { %v851_v44 = vadd.f32 %v3860_v42, %v4571_v16  ;;  %v842_v45 = vpop.f32.mrb[49].mxu0  ;;  %3630 = vmatprep.subr.bf16.mxu1 %v4153_v14 }
 0x157   :  { %v843_v17 = vadd.f32 %v4571_v16, %v842_v45  ;;  %v3861_v50 = vpop.f32.mrb[50].mxu0  ;;  %v4166_v45 = vld [vmem:[%s5281_s3 + $0x188] sm:$0xff]  }
 0x158   :  { %v1211_v51 = vmax.f32 %v851_v44, 0.0  ;;  %v854_v52 = vadd.f32 %v3861_v50, %v4571_v16  ;;  %v845_v53 = vpop.f32.mrb[51].mxu0  ;;  %v4167_v50 = vld [vmem:[%s5281_s3 + $0x1d0] sm:$0xff]  }
 0x159   :  { %v1209_v54 = vmax.f32 %v843_v17, 0.0  ;;  %v846_v32 = vadd.f32 %v4571_v16, %v845_v53  ;;  %3631 = vmatpush3.bf16.msra.mxu1 %v4154_v43 }
 0x15a   :  { %v1212_v56 = vmax.f32 %v854_v52, 0.0  ;;  %3632 = vmatprep.subr.bf16.mxu1 %v4155_v47 }
 0x15b   :  { %v1323_v58 = vmax.f32 %v1209_v54, %v1211_v51  ;;  %v1210_v59 = vmax.f32 %v846_v32, 0.0 }
 0x15d   :  { %v1325_v60 = vmax.f32 %v4692_v49, %v1323_v58  ;;  %v1324_v61 = vmax.f32 %v1210_v59, %v1212_v56  ;;  %3633 = vmatpush3.bf16.msra.mxu1 %v4156_v55  ;;  %v3864_v63 = vpop.f32.mrb[52].mxu0  ;;  %v4168_v58 = vld [vmem:[%s5281_s3 + $0x190] sm:$0xff]  }
 0x15e   :  { %v867_v2 = vadd.f32 %v3864_v63, %v4571_v16  ;;  %v858_v3 = vpop.f32.mrb[53].mxu0  ;;  %3634 = vmatprep.subr.bf16.mxu1 %v4157_v57 }
 0x15f   :  { %v1326_v6 = vmax.f32 %v4694_v30, %v1324_v61  ;;  %v859_v48 = vadd.f32 %v4571_v16, %v858_v3  ;;  %v3865_v49 = vpop.f32.mrb[54].mxu0  ;;  %v4161_v30 = vld [vmem:[%s5281_s3 + $0x178] sm:$0xff]  }
 0x160   :  { %v1215_v7 = vmax.f32 %v867_v2, 0.0  ;;  %v870_v8 = vadd.f32 %v3865_v49, %v4571_v16  ;;  %v861_v9 = vpop.f32.mrb[55].mxu0  ;;  %v4170_v3 = vld [vmem:[%s5281_s3 + $0x198] sm:$0xff]  }
 0x161   :  { %v1327_v10 = vpack.c.bf16 %v1326_v6, %v1325_v60  ;;  %v1213_v11 = vmax.f32 %v859_v48, 0.0  ;;  %v862_v12 = vadd.f32 %v4571_v16, %v861_v9  ;;  %3635 = vmatpush3.bf16.msra.mxu1 %v4158_v1  ;;  %v4171_v48 = vld [vmem:[%s5281_s3 + $0x1e0] sm:$0xff]  }
 0x162   :  { %v1216_v15 = vmax.f32 %v870_v8, 0.0  ;;  %3636 = vmatprep.subr.bf16.mxu1 %v4159_v5 }
 0x163   :  { %v1331_v62 = vmax.f32 %v1213_v11, %v1215_v7  ;;  %v1214_v18 = vmax.f32 %v862_v12, 0.0 }
 0x165   :  { %v1333_v19 = vmax.f32 %v4712_v46, %v1331_v62  ;;  %v1332_v20 = vmax.f32 %v1214_v18, %v1216_v15  ;;  %3637 = vmatpush3.bf16.msra.mxu1 %v4160_v13  ;;  %v3868_v23 = vpop.f32.mrb[56].mxu0  ;;  %v4172_v15 = vld [vmem:[%s5281_s3 + $0x1a0] sm:$0xff]  }
 0x166   :  { %v883_v0 = vadd.f32 %v3868_v23, %v4571_v16  ;;  %v874_v26 = vpop.f32.mrb[57].mxu0  ;;  %3638 = vmatprep.subr.bf16.mxu1 %v4161_v30  ;;  %v4174_v23 = vld [vmem:[%s5281_s3 + $0x1a8] sm:$0xff]  }
 0x167   :  { %v1334_v28 = vmax.f32 %v4714_v4, %v1332_v20  ;;  %v875_v29 = vadd.f32 %v4571_v16, %v874_v26  ;;  %v3869_v46 = vpop.f32.mrb[58].mxu0  ;;  %v4165_v4 = vld [vmem:[%s5281_s3 + $0x1c8] sm:$0xff]   ;;  %v4175_v26 = vld [vmem:[%s5281_s3 + $0x1f0] sm:$0xff]  }
 0x168   :  { %v1219_v31 = vmax.f32 %v883_v0, 0.0  ;;  %v886_v21 = vadd.f32 %v3869_v46, %v4571_v16  ;;  %v877_v33 = vpop.f32.mrb[59].mxu0 }
 0x169   :  { %v1217_v34 = vmax.f32 %v875_v29, 0.0  ;;  %v878_v35 = vadd.f32 %v4571_v16, %v877_v33  ;;  %3639 = vmatpush3.bf16.msra.mxu1 %v4162_v25  ;;  %v1335_v36 = vpack.c.bf16 %v1334_v28, %v1333_v19 }
 0x16a   :  { %v1220_v38 = vmax.f32 %v886_v21, 0.0  ;;  %3646 = vmatprep.subr.bf16.mxu1 %v4163_v27 }
 0x16b   :  { %v1339_v14 = vmax.f32 %v1217_v34, %v1219_v31  ;;  %v1218_v40 = vmax.f32 %v878_v35, 0.0  ;;  %2578 = vmatprep.mubr.bf16.mxu1 %v1335_v36  ;;  %v4176_v34 = vld [vmem:[%s5281_s3 + $0x1b0] sm:$0xff]   ;;  %v4177_v36 = vld [vmem:[%s5281_s3 + $0x1f8] sm:$0xff]  }
 0x16c   :  { %2579 = vmatmul.mubr.bf16.vlgmr.msra.gmra.mrb[8].mxu1 %v1327_v10 }
 0x16d   :  { %v1341_v42 = vmax.f32 %v4732_v22, %v1339_v14  ;;  %v1340_v43 = vmax.f32 %v1218_v40, %v1220_v38  ;;  %3647 = vmatpush3.bf16.msra.mxu1 %v4164_v37  ;;  %v3872_v44 = vpop.f32.mrb[60].mxu0  ;;  %v4178_v40 = vld [vmem:[%s5281_s3 + $0x1b8] sm:$0xff]  }
 0x16e   :  { %v899_v47 = vadd.f32 %v3872_v44, %v4571_v16  ;;  %v890_v17 = vpop.f32.mrb[61].mxu0  ;;  %3648 = vmatprep.subr.bf16.mxu1 %v4165_v4  ;;  %v4179_v44 = vld [vmem:[%s5281_s3 + $0x240] sm:$0xff]  }
 0x16f   :  { %v1342_v51 = vmax.f32 %v4735_v24, %v1340_v43  ;;  %v891_v52 = vadd.f32 %v4571_v16, %v890_v17  ;;  %v3873_v22 = vpop.f32.mrb[62].mxu0  ;;  %v4169_v24 = vld [vmem:[%s5281_s3 + $0x1d8] sm:$0xff]  }
 0x170   :  { %v1223_v53 = vmax.f32 %v899_v47, 0.0  ;;  %v902_v54 = vadd.f32 %v3873_v22, %v4571_v16  ;;  %v893_v32 = vpop.f32.mrb[63].mxu0 }
 0x171   :  { %v4820_v55 = vpack.c.bf16 %v1342_v51, %v1341_v42  ;;  %v1221_v56 = vmax.f32 %v891_v52, 0.0  ;;  %v894_v57 = vadd.f32 %v4571_v16, %v893_v32  ;;  %3649 = vmatpush3.bf16.msra.mxu1 %v4166_v45  ;;  %v4181_v32 = vld [vmem:[%s5281_s3 + $0x248] sm:$0xff]  }
 0x172   :  { %v1224_v59 = vmax.f32 %v902_v54, 0.0  ;;  %3650 = vmatprep.subr.bf16.mxu1 %v4167_v50 }
 0x173   :  { %v1347_v60 = vmax.f32 %v1221_v56, %v1223_v53  ;;  %v1222_v61 = vmax.f32 %v894_v57, 0.0  ;;  %v4180_v53 = vld [vmem:[%s5281_s3 + $0x200] sm:$0xff]  }
 0x175   :  { %v1349_v63 = vmax.f32 %v4753_v39, %v1347_v60  ;;  %v1348_v1 = vmax.f32 %v1222_v61, %v1224_v59  ;;  %3651 = vmatpush3.bf16.msra.mxu1 %v4168_v58  ;;  %v3876_v2 = vpop.f32.mrb[64].mxu0 }
 0x176   :  { %v915_v5 = vadd.f32 %v3876_v2, %v4571_v16  ;;  %v906_v6 = vpop.f32.mrb[65].mxu0  ;;  %3652 = vmatprep.subr.bf16.mxu1 %v4169_v24  ;;  %v4182_v24 = vld [vmem:[%s5281_s3 + $0x208] sm:$0xff]  }
 0x177   :  { %v1350_v49 = vmax.f32 %v4755_v41, %v1348_v1  ;;  %v907_v7 = vadd.f32 %v4571_v16, %v906_v6  ;;  %v3877_v39 = vpop.f32.mrb[66].mxu0  ;;  %v4173_v41 = vld [vmem:[%s5281_s3 + $0x1e8] sm:$0xff]  }
 0x178   :  { %v1227_v8 = vmax.f32 %v915_v5, 0.0  ;;  %v918_v9 = vadd.f32 %v3877_v39, %v4571_v16  ;;  %v909_v10 = vpop.f32.mrb[67].mxu0  ;;  %v4185_v39 = vld [vmem:[%s5281_s3 + $0x258] sm:$0xff]  }
 0x179   :  { %v1225_v11 = vmax.f32 %v907_v7, 0.0  ;;  %v910_v12 = vadd.f32 %v4571_v16, %v909_v10  ;;  %3653 = vmatpush3.bf16.msra.mxu1 %v4170_v3  ;;  %v1351_v13 = vpack.c.bf16 %v1350_v49, %v1349_v63  ;;  %v4183_v63 = vld [vmem:[%s5281_s3 + $0x250] sm:$0xff]  }
 0x17a   :  { %v1228_v30 = vmax.f32 %v918_v9, 0.0  ;;  %3654 = vmatprep.subr.bf16.mxu1 %v4171_v48  ;;  %v4184_v49 = vld [vmem:[%s5281_s3 + $0x210] sm:$0xff]  }
 0x17b   :  { %v4847_v62 = vmax.f32 %v1225_v11, %v1227_v8  ;;  %v1226_v18 = vmax.f32 %v910_v12, 0.0  ;;  %2619 = vmatprep.mubr.bf16.mxu1 %v1351_v13  ;;  %v4186_v12 = vld [vmem:[%s5281_s3 + $0x218] sm:$0xff]  }
 0x17d   :  { %v4849_v19 = vmax.f32 %v1226_v18, %v1228_v30  ;;  %3655 = vmatpush3.bf16.msra.mxu1 %v4172_v15  ;;  %v3880_v20 = vpop.f32.mrb[68].mxu0  ;;  %v4187_v30 = vld [vmem:[%s5281_s3 + $0x260] sm:$0xff]  }
 0x17e   :  { %v931_v25 = vadd.f32 %v3880_v20, %v4571_v16  ;;  %v922_v0 = vpop.f32.mrb[69].mxu0  ;;  %3656 = vmatprep.subr.bf16.mxu1 %v4173_v41 }
 0x17f   :  { %v923_v27 = vadd.f32 %v4571_v16, %v922_v0  ;;  %v3881_v28 = vpop.f32.mrb[70].mxu0 }
 0x180   :  { %v1231_v29 = vmax.f32 %v931_v25, 0.0  ;;  %v934_v46 = vadd.f32 %v3881_v28, %v4571_v16  ;;  %v925_v31 = vpop.f32.mrb[71].mxu0 }
 0x181   :  { %v1229_v21 = vmax.f32 %v923_v27, 0.0  ;;  %v926_v33 = vadd.f32 %v4571_v16, %v925_v31  ;;  %3657 = vmatpush3.bf16.msra.mxu1 %v4174_v23  ;;  %v4188_v27 = vld [vmem:[%s5281_s3 + $0x220] sm:$0xff]  }
 0x182   :  { %v1232_v35 = vmax.f32 %v934_v46, 0.0  ;;  %3658 = vmatprep.subr.bf16.mxu1 %v4175_v26 }
 0x183   :  { %v4867_v37 = vmax.f32 %v1229_v21, %v1231_v29  ;;  %v1230_v38 = vmax.f32 %v926_v33, 0.0  ;;  %v4189_v29 = vld [vmem:[%s5281_s3 + $0x268] sm:$0xff]  }
 0x185   :  { %v4869_v4 = vmax.f32 %v1230_v38, %v1232_v35  ;;  %3659 = vmatpush3.bf16.msra.mxu1 %v4176_v34  ;;  %v3884_v14 = vpop.f32.mrb[72].mxu0  ;;  %v4190_v35 = vld [vmem:[%s5281_s3 + $0x228] sm:$0xff]  }
 0x186   :  { %v947_v42 = vadd.f32 %v3884_v14, %v4571_v16  ;;  %v938_v43 = vpop.f32.mrb[73].mxu0  ;;  %3660 = vmatprep.subr.bf16.mxu1 %v4177_v36  ;;  %v4191_v14 = vld [vmem:[%s5281_s3 + $0x270] sm:$0xff]  }
 0x187   :  { %v939_v45 = vadd.f32 %v4571_v16, %v938_v43  ;;  %v3885_v47 = vpop.f32.mrb[74].mxu0 }
 0x188   :  { %v1235_v17 = vmax.f32 %v947_v42, 0.0  ;;  %v950_v50 = vadd.f32 %v3885_v47, %v4571_v16  ;;  %v941_v51 = vpop.f32.mrb[75].mxu0 }
 0x189   :  { %v1233_v52 = vmax.f32 %v939_v45, 0.0  ;;  %v942_v22 = vadd.f32 %v4571_v16, %v941_v51  ;;  %3661 = vmatpush3.bf16.msra.mxu1 %v4178_v40  ;;  %v4192_v51 = vld [vmem:[%s5281_s3 + $0x230] sm:$0xff]  }
 0x18a   :  { %v1236_v54 = vmax.f32 %v950_v50, 0.0  ;;  %3668 = vmatprep.subr.bf16.mxu1 %v4179_v44 }
 0x18b   :  { %v4887_v56 = vmax.f32 %v1233_v52, %v1235_v17  ;;  %v1234_v57 = vmax.f32 %v942_v22, 0.0 }
 0x18c   :  { %2620 = vmatmul.mubr.bf16.vlgmr.msra.gmra.mrb[12].mxu1 %v4820_v55 }
 0x18d   :  { %v4890_v58 = vmax.f32 %v1234_v57, %v1236_v54  ;;  %3669 = vmatpush3.bf16.msra.mxu1 %v4180_v53  ;;  %v3888_v59 = vpop.f32.mrb[76].mxu0 }
 0x18e   :  { %v963_v60 = vadd.f32 %v3888_v59, %v4571_v16  ;;  %v954_v61 = vpop.f32.mrb[77].mxu0  ;;  %3670 = vmatprep.subr.bf16.mxu1 %v4181_v32  ;;  %v4194_v59 = vld [vmem:[%s5281_s3 + $0x238] sm:$0xff]  }
 0x18f   :  { %v955_v1 = vadd.f32 %v4571_v16, %v954_v61  ;;  %v3889_v2 = vpop.f32.mrb[78].mxu0  ;;  %v4195_v61 = vld [vmem:[%s5281_s3 + $0x2c0] sm:$0xff]  }
 0x190   :  { %v1239_v55 = vmax.f32 %v963_v60, 0.0  ;;  %v966_v3 = vadd.f32 %v3889_v2, %v4571_v16  ;;  %v957_v5 = vpop.f32.mrb[79].mxu0 }
 0x191   :  { %v1237_v6 = vmax.f32 %v955_v1, 0.0  ;;  %v958_v48 = vadd.f32 %v4571_v16, %v957_v5  ;;  %3671 = vmatpush3.bf16.msra.mxu1 %v4182_v24 }
 0x192   :  { %v1240_v7 = vmax.f32 %v966_v3, 0.0  ;;  %3672 = vmatprep.subr.bf16.mxu1 %v4183_v63 }
 0x193   :  { %v4908_v8 = vmax.f32 %v1237_v6, %v1239_v55  ;;  %v1238_v9 = vmax.f32 %v958_v48, 0.0 }
 0x195   :  { %v4910_v10 = vmax.f32 %v1238_v9, %v1240_v7  ;;  %3673 = vmatpush3.bf16.msra.mxu1 %v4184_v49  ;;  %v3892_v11 = vpop.f32.mrb[80].mxu0  ;;  %v4196_v49 = vld [vmem:[%s5281_s3 + $0x280] sm:$0xff]  }
 0x196   :  { %v979_v13 = vadd.f32 %v3892_v11, %v4571_v16  ;;  %v970_v15 = vpop.f32.mrb[81].mxu0  ;;  %3674 = vmatprep.subr.bf16.mxu1 %v4185_v39 }
 0x197   :  { %v971_v41 = vadd.f32 %v4571_v16, %v970_v15  ;;  %v3893_v18 = vpop.f32.mrb[82].mxu0  ;;  %v4971_v15 = vld [vmem:[%s5280_s2] ss:$0 sm:$0xff] }
 0x198   :  { %v1243_v20 = vmax.f32 %v979_v13, 0.0  ;;  %v982_v23 = vadd.f32 %v3893_v18, %v4571_v16  ;;  %v973_v25 = vpop.f32.mrb[83].mxu0  ;;  %v4198_v13 = vld [vmem:[%s5281_s3 + $0x288] sm:$0xff]  }
 0x199   :  { %v1241_v0 = vmax.f32 %v971_v41, 0.0  ;;  %v974_v26 = vadd.f32 %v4571_v16, %v973_v25  ;;  %3675 = vmatpush3.bf16.msra.mxu1 %v4186_v12 }
 0x19a   :  { %v1244_v28 = vmax.f32 %v982_v23, 0.0  ;;  %3676 = vmatprep.subr.bf16.mxu1 %v4187_v30 }
 0x19b   :  { %v1355_v46 = vmax.f32 %v1241_v0, %v1243_v20  ;;  %v1242_v31 = vmax.f32 %v974_v26, 0.0 }
 0x19d   :  { %v1357_v21 = vmax.f32 %v4847_v62, %v1355_v46  ;;  %v1356_v33 = vmax.f32 %v1242_v31, %v1244_v28  ;;  %3677 = vmatpush3.bf16.msra.mxu1 %v4188_v27  ;;  %v3896_v34 = vpop.f32.mrb[84].mxu0  ;;  %v4200_v46 = vld [vmem:[%s5281_s3 + $0x290] sm:$0xff]  }
 0x19e   :  { %v995_v36 = vadd.f32 %v3896_v34, %v4571_v16  ;;  %v986_v38 = vpop.f32.mrb[85].mxu0  ;;  %3678 = vmatprep.subr.bf16.mxu1 %v4189_v29 }
 0x19f   :  { %v1358_v40 = vmax.f32 %v4849_v19, %v1356_v33  ;;  %v987_v42 = vadd.f32 %v4571_v16, %v986_v38  ;;  %v3897_v62 = vpop.f32.mrb[86].mxu0  ;;  %v4193_v19 = vld [vmem:[%s5281_s3 + $0x278] sm:$0xff]  }
 0x1a0   :  { %v1247_v43 = vmax.f32 %v995_v36, 0.0  ;;  %v998_v44 = vadd.f32 %v3897_v62, %v4571_v16  ;;  %v989_v45 = vpop.f32.mrb[87].mxu0  ;;  %v4202_v38 = vld [vmem:[%s5281_s3 + $0x298] sm:$0xff]  }
 0x1a1   :  { %v1359_v47 = vpack.c.bf16 %v1358_v40, %v1357_v21  ;;  %v1245_v17 = vmax.f32 %v987_v42, 0.0  ;;  %v990_v50 = vadd.f32 %v4571_v16, %v989_v45  ;;  %3679 = vmatpush3.bf16.msra.mxu1 %v4190_v35  ;;  %v4203_v42 = vld [vmem:[%s5281_s3 + $0x2e0] sm:$0xff]  }
 0x1a2   :  { %v1248_v52 = vmax.f32 %v998_v44, 0.0  ;;  %3680 = vmatprep.subr.bf16.mxu1 %v4191_v14 }
 0x1a3   :  { %v1363_v22 = vmax.f32 %v1245_v17, %v1247_v43  ;;  %v1246_v53 = vmax.f32 %v990_v50, 0.0 }
 0x1a5   :  { %v1365_v54 = vmax.f32 %v4867_v37, %v1363_v22  ;;  %v1364_v32 = vmax.f32 %v1246_v53, %v1248_v52  ;;  %3681 = vmatpush3.bf16.msra.mxu1 %v4192_v51  ;;  %v3900_v57 = vpop.f32.mrb[88].mxu0  ;;  %v4204_v52 = vld [vmem:[%s5281_s3 + $0x2a0] sm:$0xff]  }
 0x1a6   :  { %v1011_v24 = vadd.f32 %v3900_v57, %v4571_v16  ;;  %v1002_v60 = vpop.f32.mrb[89].mxu0  ;;  %3682 = vmatprep.subr.bf16.mxu1 %v4193_v19  ;;  %v4206_v57 = vld [vmem:[%s5281_s3 + $0x2a8] sm:$0xff]  }
 0x1a7   :  { %v1366_v63 = vmax.f32 %v4869_v4, %v1364_v32  ;;  %v1003_v1 = vadd.f32 %v4571_v16, %v1002_v60  ;;  %v3901_v37 = vpop.f32.mrb[90].mxu0  ;;  %v4197_v4 = vld [vmem:[%s5281_s3 + $0x2c8] sm:$0xff]   ;;  %v4207_v60 = vld [vmem:[%s5281_s3 + $0x2f0] sm:$0xff]  }
 0x1a8   :  { %v1251_v2 = vmax.f32 %v1011_v24, 0.0  ;;  %v1014_v55 = vadd.f32 %v3901_v37, %v4571_v16  ;;  %v1005_v3 = vpop.f32.mrb[91].mxu0 }
 0x1a9   :  { %v1249_v5 = vmax.f32 %v1003_v1, 0.0  ;;  %v1006_v6 = vadd.f32 %v4571_v16, %v1005_v3  ;;  %3683 = vmatpush3.bf16.msra.mxu1 %v4194_v59  ;;  %v1367_v48 = vpack.c.bf16 %v1366_v63, %v1365_v54 }
 0x1aa   :  { %v1252_v7 = vmax.f32 %v1014_v55, 0.0  ;;  %3690 = vmatprep.subr.bf16.mxu1 %v4195_v61 }
 0x1ab   :  { %v1371_v39 = vmax.f32 %v1249_v5, %v1251_v2  ;;  %v1250_v9 = vmax.f32 %v1006_v6, 0.0  ;;  %2660 = vmatprep.mubr.bf16.mxu1 %v1367_v48  ;;  %v4208_v5 = vld [vmem:[%s5281_s3 + $0x2b0] sm:$0xff]   ;;  %v4209_v48 = vld [vmem:[%s5281_s3 + $0x2f8] sm:$0xff]  }
 0x1ac   :  { %2661 = vmatmul.mubr.bf16.vlgmr.msra.gmra.mrb[16].mxu1 %v1359_v47 }
 0x1ad   :  { %v1373_v11 = vmax.f32 %v4887_v56, %v1371_v39  ;;  %v1372_v12 = vmax.f32 %v1250_v9, %v1252_v7  ;;  %3691 = vmatpush3.bf16.msra.mxu1 %v4196_v49  ;;  %v3904_v16 = vpop.f32.mrb[92].mxu0  ;;  %v4199_v56 = vld [vmem:[%s5281_s3 + $0x2d0] sm:$0xff]   ;;  %v4210_v9 = vld [vmem:[%s5281_s3 + $0x2b8] sm:$0xff]  }
 0x1ae   :  { %v1027_v30 = vadd.f32 %v4971_v15, %v3904_v16  ;;  %v1018_v41 = vpop.f32.mrb[93].mxu0  ;;  %3692 = vmatprep.subr.bf16.mxu1 %v4197_v4  ;;  %v4211_v16 = vld [vmem:[%s5281_s3 + $0x340] sm:$0xff]  }
 0x1af   :  { %v1374_v18 = vmax.f32 %v4890_v58, %v1372_v12  ;;  %v1019_v20 = vadd.f32 %v4971_v15, %v1018_v41  ;;  %v3905_v23 = vpop.f32.mrb[94].mxu0  ;;  %v4201_v58 = vld [vmem:[%s5281_s3 + $0x2d8] sm:$0xff]  }
 0x1b0   :  { %v1255_v25 = vmax.f32 %v1027_v30, 0.0  ;;  %v1030_v0 = vadd.f32 %v4971_v15, %v3905_v23  ;;  %v1021_v26 = vpop.f32.mrb[95].mxu0 }
 0x1b1   :  { %v4980_v27 = vpack.c.bf16 %v1374_v18, %v1373_v11  ;;  %v1253_v28 = vmax.f32 %v1019_v20, 0.0  ;;  %v1022_v29 = vadd.f32 %v4971_v15, %v1021_v26  ;;  %3693 = vmatpush3.bf16.msra.mxu1 %v4198_v13  ;;  %v4213_v26 = vld [vmem:[%s5281_s3 + $0x348] sm:$0xff]  }
 0x1b2   :  { %v1256_v31 = vmax.f32 %v1030_v0, 0.0  ;;  %3694 = vmatprep.subr.bf16.mxu1 %v4199_v56 }
 0x1b3   :  { %v1379_v21 = vmax.f32 %v1253_v28, %v1255_v25  ;;  %v1254_v33 = vmax.f32 %v1022_v29, 0.0  ;;  %v4212_v25 = vld [vmem:[%s5281_s3 + $0x300] sm:$0xff]  }
 0x1b5   :  { %v1381_v34 = vmax.f32 %v4908_v8, %v1379_v21  ;;  %v1380_v35 = vmax.f32 %v1254_v33, %v1256_v31  ;;  %3695 = vmatpush3.bf16.msra.mxu1 %v4200_v46  ;;  %v3908_v36 = vpop.f32.mrb[96].mxu0 }
 0x1b6   :  { %v1043_v14 = vadd.f32 %v4971_v15, %v3908_v36  ;;  %v1034_v40 = vpop.f32.mrb[97].mxu0  ;;  %3696 = vmatprep.subr.bf16.mxu1 %v4201_v58  ;;  %v4214_v58 = vld [vmem:[%s5281_s3 + $0x308] sm:$0xff]  }
 0x1b7   :  { %v1382_v62 = vmax.f32 %v4910_v10, %v1380_v35  ;;  %v1035_v43 = vadd.f32 %v4971_v15, %v1034_v40  ;;  %v3909_v8 = vpop.f32.mrb[98].mxu0  ;;  %v4205_v10 = vld [vmem:[%s5281_s3 + $0x2e8] sm:$0xff]  }
 0x1b8   :  { %v1259_v44 = vmax.f32 %v1043_v14, 0.0  ;;  %v1046_v45 = vadd.f32 %v4971_v15, %v3909_v8  ;;  %v1037_v47 = vpop.f32.mrb[99].mxu0  ;;  %v4217_v8 = vld [vmem:[%s5281_s3 + $0x358] sm:$0xff]  }
 0x1b9   :  { %v1257_v17 = vmax.f32 %v1035_v43, 0.0  ;;  %v1038_v50 = vadd.f32 %v4971_v15, %v1037_v47  ;;  %3697 = vmatpush3.bf16.msra.mxu1 %v4202_v38  ;;  %v1383_v51 = vpack.c.bf16 %v1382_v62, %v1381_v34  ;;  %v4215_v34 = vld [vmem:[%s5281_s3 + $0x350] sm:$0xff]  }
 0x1ba   :  { %v1260_v19 = vmax.f32 %v1046_v45, 0.0  ;;  %3698 = vmatprep.subr.bf16.mxu1 %v4203_v42  ;;  %v4216_v62 = vld [vmem:[%s5281_s3 + $0x310] sm:$0xff]  }
 0x1bb   :  { %v5007_v22 = vmax.f32 %v1257_v17, %v1259_v44  ;;  %v1258_v53 = vmax.f32 %v1038_v50, 0.0  ;;  %2701 = vmatprep.mubr.bf16.mxu1 %v1383_v51  ;;  %v4218_v50 = vld [vmem:[%s5281_s3 + $0x318] sm:$0xff]  }
 0x1bd   :  { %v5009_v54 = vmax.f32 %v1258_v53, %v1260_v19  ;;  %3699 = vmatpush3.bf16.msra.mxu1 %v4204_v52  ;;  %v3912_v32 = vpop.f32.mrb[100].mxu0  ;;  %v4219_v19 = vld [vmem:[%s5281_s3 + $0x360] sm:$0xff]  }
 0x1be   :  { %v1059_v59 = vadd.f32 %v4971_v15, %v3912_v32  ;;  %v1050_v24 = vpop.f32.mrb[101].mxu0  ;;  %3700 = vmatprep.subr.bf16.mxu1 %v4205_v10 }
 0x1bf   :  { %v1051_v61 = vadd.f32 %v4971_v15, %v1050_v24  ;;  %v3913_v63 = vpop.f32.mrb[102].mxu0 }
 0x1c0   :  { %v1263_v1 = vmax.f32 %v1059_v59, 0.0  ;;  %v1062_v37 = vadd.f32 %v4971_v15, %v3913_v63  ;;  %v1053_v2 = vpop.f32.mrb[103].mxu0 }
 0x1c1   :  { %v1261_v55 = vmax.f32 %v1051_v61, 0.0  ;;  %v1054_v3 = vadd.f32 %v4971_v15, %v1053_v2  ;;  %3701 = vmatpush3.bf16.msra.mxu1 %v4206_v57  ;;  %v4220_v61 = vld [vmem:[%s5281_s3 + $0x320] sm:$0xff]  }
 0x1c2   :  { %v1264_v6 = vmax.f32 %v1062_v37, 0.0  ;;  %3702 = vmatprep.subr.bf16.mxu1 %v4207_v60 }
 0x1c3   :  { %v5027_v49 = vmax.f32 %v1261_v55, %v1263_v1  ;;  %v1262_v7 = vmax.f32 %v1054_v3, 0.0  ;;  %v4221_v1 = vld [vmem:[%s5281_s3 + $0x368] sm:$0xff]  }
 0x1c5   :  { %v5029_v4 = vmax.f32 %v1262_v7, %v1264_v6  ;;  %3703 = vmatpush3.bf16.msra.mxu1 %v4208_v5  ;;  %v3916_v39 = vpop.f32.mrb[104].mxu0  ;;  %v4222_v6 = vld [vmem:[%s5281_s3 + $0x328] sm:$0xff]  }
 0x1c6   :  { %v1075_v11 = vadd.f32 %v4971_v15, %v3916_v39  ;;  %v1066_v12 = vpop.f32.mrb[105].mxu0  ;;  %3704 = vmatprep.subr.bf16.mxu1 %v4209_v48  ;;  %v4223_v39 = vld [vmem:[%s5281_s3 + $0x370] sm:$0xff]  }
 0x1c7   :  { %v1067_v13 = vadd.f32 %v4971_v15, %v1066_v12  ;;  %v3917_v30 = vpop.f32.mrb[106].mxu0 }
 0x1c8   :  { %v1267_v41 = vmax.f32 %v1075_v11, 0.0  ;;  %v1078_v56 = vadd.f32 %v4971_v15, %v3917_v30  ;;  %v1069_v18 = vpop.f32.mrb[107].mxu0 }
 0x1c9   :  { %v1265_v20 = vmax.f32 %v1067_v13, 0.0  ;;  %v1070_v23 = vadd.f32 %v4971_v15, %v1069_v18  ;;  %3705 = vmatpush3.bf16.msra.mxu1 %v4210_v9  ;;  %v4224_v18 = vld [vmem:[%s5281_s3 + $0x330] sm:$0xff]  }
 0x1ca   :  { %v1268_v0 = vmax.f32 %v1078_v56, 0.0  ;;  %3712 = vmatprep.subr.bf16.mxu1 %v4211_v16 }
 0x1cb   :  { %v5047_v28 = vmax.f32 %v1265_v20, %v1267_v41  ;;  %v1266_v29 = vmax.f32 %v1070_v23, 0.0 }
 0x1cc   :  { %2702 = vmatmul.mubr.bf16.vlgmr.msra.gmra.mrb[20].mxu1 %v4980_v27 }
 0x1cd   :  { %v5050_v46 = vmax.f32 %v1266_v29, %v1268_v0  ;;  %3713 = vmatpush3.bf16.msra.mxu1 %v4212_v25  ;;  %v3920_v31 = vpop.f32.mrb[108].mxu0 }
 0x1ce   :  { %v1091_v21 = vadd.f32 %v4971_v15, %v3920_v31  ;;  %v1082_v33 = vpop.f32.mrb[109].mxu0  ;;  %3714 = vmatprep.subr.bf16.mxu1 %v4213_v26  ;;  %v4226_v31 = vld [vmem:[%s5281_s3 + $0x338] sm:$0xff]  }
 0x1cf   :  { %v1083_v35 = vadd.f32 %v4971_v15, %v1082_v33  ;;  %v3921_v36 = vpop.f32.mrb[110].mxu0  ;;  %v4227_v33 = vld [vmem:[%s5281_s3 + $0x3c0] sm:$0xff]  }
 0x1d0   :  { %v1271_v27 = vmax.f32 %v1091_v21, 0.0  ;;  %v1094_v38 = vadd.f32 %v4971_v15, %v3921_v36  ;;  %v1085_v14 = vpop.f32.mrb[111].mxu0 }
 0x1d1   :  { %v1269_v40 = vmax.f32 %v1083_v35, 0.0  ;;  %v1086_v42 = vadd.f32 %v4971_v15, %v1085_v14  ;;  %3715 = vmatpush3.bf16.msra.mxu1 %v4214_v58 }
 0x1d2   :  { %v1272_v43 = vmax.f32 %v1094_v38, 0.0  ;;  %3716 = vmatprep.subr.bf16.mxu1 %v4215_v34 }
 0x1d3   :  { %v5068_v44 = vmax.f32 %v1269_v40, %v1271_v27  ;;  %v1270_v45 = vmax.f32 %v1086_v42, 0.0 }
 0x1d5   :  { %v5070_v47 = vmax.f32 %v1270_v45, %v1272_v43  ;;  %3717 = vmatpush3.bf16.msra.mxu1 %v4216_v62  ;;  %v3924_v17 = vpop.f32.mrb[112].mxu0  ;;  %v4228_v62 = vld [vmem:[%s5281_s3 + $0x380] sm:$0xff]  }
 0x1d6   :  { %v1107_v51 = vadd.f32 %v4971_v15, %v3924_v17  ;;  %v1098_v52 = vpop.f32.mrb[113].mxu0  ;;  %3718 = vmatprep.subr.bf16.mxu1 %v4217_v8 }
 0x1d7   :  { %v1099_v10 = vadd.f32 %v4971_v15, %v1098_v52  ;;  %v3925_v53 = vpop.f32.mrb[114].mxu0  ;;  %v4230_v52 = vld [vmem:[%s5281_s3 + $0x388] sm:$0xff]  }
 0x1d8   :  { %v1275_v32 = vmax.f32 %v1107_v51, 0.0  ;;  %v1110_v57 = vadd.f32 %v4971_v15, %v3925_v53  ;;  %v1101_v59 = vpop.f32.mrb[115].mxu0  ;;  %v4231_v53 = vld [vmem:[%s5281_s3 + $0x3d0] sm:$0xff]  }
 0x1d9   :  { %v1273_v24 = vmax.f32 %v1099_v10, 0.0  ;;  %v1102_v60 = vadd.f32 %v4971_v15, %v1101_v59  ;;  %3719 = vmatpush3.bf16.msra.mxu1 %v4218_v50 }
 0x1da   :  { %v1276_v63 = vmax.f32 %v1110_v57, 0.0  ;;  %3720 = vmatprep.subr.bf16.mxu1 %v4219_v19 }
 0x1db   :  { %v1387_v37 = vmax.f32 %v1273_v24, %v1275_v32  ;;  %v1274_v2 = vmax.f32 %v1102_v60, 0.0 }
 0x1dd   :  { %v1389_v55 = vmax.f32 %v5007_v22, %v1387_v37  ;;  %v1388_v3 = vmax.f32 %v1274_v2, %v1276_v63  ;;  %3721 = vmatpush3.bf16.msra.mxu1 %v4220_v61  ;;  %v3928_v5 = vpop.f32.mrb[116].mxu0  ;;  %v4232_v37 = vld [vmem:[%s5281_s3 + $0x390] sm:$0xff]  }
 0x1de   :  { %v1123_v48 = vadd.f32 %v4971_v15, %v3928_v5  ;;  %v1114_v7 = vpop.f32.mrb[117].mxu0  ;;  %3722 = vmatprep.subr.bf16.mxu1 %v4221_v1 }
 0x1df   :  { %v1390_v9 = vmax.f32 %v5009_v54, %v1388_v3  ;;  %v1115_v11 = vadd.f32 %v4971_v15, %v1114_v7  ;;  %v3929_v22 = vpop.f32.mrb[118].mxu0  ;;  %v4225_v54 = vld [vmem:[%s5281_s3 + $0x378] sm:$0xff]  }
 0x1e0   :  { %v1279_v12 = vmax.f32 %v1123_v48, 0.0  ;;  %v1126_v16 = vadd.f32 %v4971_v15, %v3929_v22  ;;  %v1117_v13 = vpop.f32.mrb[119].mxu0  ;;  %v4235_v48 = vld [vmem:[%s5281_s3 + $0x3e0] sm:$0xff]  }
 0x1e1   :  { %v1391_v30 = vpack.c.bf16 %v1390_v9, %v1389_v55  ;;  %v1277_v41 = vmax.f32 %v1115_v11, 0.0  ;;  %v1118_v56 = vadd.f32 %v4971_v15, %v1117_v13  ;;  %3723 = vmatpush3.bf16.msra.mxu1 %v4222_v6  ;;  %v4236_v9 = vld [vmem:[%s5281_s3 + $0x3a0] sm:$0xff]   ;;  %v4238_v11 = vld [vmem:[%s5281_s3 + $0x3a8] sm:$0xff]  }
 0x1e2   :  { %v1280_v20 = vmax.f32 %v1126_v16, 0.0  ;;  %3724 = vmatprep.subr.bf16.mxu1 %v4223_v39 }
 0x1e3   :  { %v1395_v23 = vmax.f32 %v1277_v41, %v1279_v12  ;;  %v1278_v25 = vmax.f32 %v1118_v56, 0.0  ;;  %v4241_v56 = vld [vmem:[%s5281_s3 + $0x3f8] sm:$0xff]  }
 0x1e5   :  { %v1397_v0 = vmax.f32 %v5027_v49, %v1395_v23  ;;  %v1396_v26 = vmax.f32 %v1278_v25, %v1280_v20  ;;  %3725 = vmatpush3.bf16.msra.mxu1 %v4224_v18  ;;  %v3932_v29 = vpop.f32.mrb[120].mxu0  ;;  %v4242_v20 = vld [vmem:[%s5281_s3 + $0x3b8] sm:$0xff]  }
 0x1e6   :  { %v1139_v58 = vadd.f32 %v4971_v15, %v3932_v29  ;;  %v1130_v21 = vpop.f32.mrb[121].mxu0  ;;  %3726 = vmatprep.subr.bf16.mxu1 %v4225_v54  ;;  %v3362_v54 = vld [vmem:[%s5282_s4] ss:$0 sm:$0xff] }
 0x1e7   :  { %v1398_v34 = vmax.f32 %v5029_v4, %v1396_v26  ;;  %v1131_v35 = vadd.f32 %v4971_v15, %v1130_v21  ;;  %v3933_v49 = vpop.f32.mrb[122].mxu0  ;;  %v4229_v4 = vld [vmem:[%s5281_s3 + $0x3c8] sm:$0xff]  }
 0x1e8   :  { %v1283_v36 = vmax.f32 %v1139_v58, 0.0  ;;  %v1142_v27 = vadd.f32 %v4971_v15, %v3933_v49  ;;  %v1133_v38 = vpop.f32.mrb[123].mxu0 }
 0x1e9   :  { %v1281_v14 = vmax.f32 %v1131_v35, 0.0  ;;  %v1134_v40 = vadd.f32 %v4971_v15, %v1133_v38  ;;  %3727 = vmatpush3.bf16.msra.mxu1 %v4226_v31  ;;  %v1399_v42 = vpack.c.bf16 %v1398_v34, %v1397_v0 }
 0x1ea   :  { %v1284_v43 = vmax.f32 %v1142_v27, 0.0  ;;  %3734 = vmatprep.subr.bf16.mxu1 %v4227_v33 }
 0x1eb   :  { %v1403_v8 = vmax.f32 %v1281_v14, %v1283_v36  ;;  %v1282_v45 = vmax.f32 %v1134_v40, 0.0  ;;  %2742 = vmatprep.mubr.bf16.mxu1 %v1399_v42 }
 0x1ec   :  { %2743 = vmatmul.mubr.bf16.vlgmr.msra.gmra.mrb[24].mxu1 %v1391_v30  ;;  %v4240_v30 = vld [vmem:[%s5281_s3 + $0x3b0] sm:$0xff]  }
 0x1ed   :  { %v1405_v17 = vmax.f32 %v5047_v28, %v1403_v8  ;;  %v1404_v50 = vmax.f32 %v1282_v45, %v1284_v43  ;;  %3735 = vmatpush3.bf16.msra.mxu1 %v4228_v62  ;;  %v3936_v51 = vpop.f32.mrb[124].mxu0 }
 0x1ee   :  { %v1155_v19 = vadd.f32 %v4971_v15, %v3936_v51  ;;  %v1146_v10 = vpop.f32.mrb[125].mxu0  ;;  %3736 = vmatprep.subr.bf16.mxu1 %v4229_v4 }
 0x1ef   :  { %v1406_v32 = vmax.f32 %v5050_v46, %v1404_v50  ;;  %v1147_v57 = vadd.f32 %v4971_v15, %v1146_v10  ;;  %v3937_v28 = vpop.f32.mrb[126].mxu0  ;;  %v4233_v46 = vld [vmem:[%s5281_s3 + $0x3d8] sm:$0xff]  }
 0x1f0   :  { %v1287_v59 = vmax.f32 %v1155_v19, 0.0  ;;  %v1158_v24 = vadd.f32 %v4971_v15, %v3937_v28  ;;  %v1149_v60 = vpop.f32.mrb[127].mxu0  ;;  %v2802_v19 = vld [vmem:[%s5283_s5] sm:$0xff] }
 0x1f1   :  { %v1407_v61 = vpack.c.bf16 %v1406_v32, %v1405_v17  ;;  %v1285_v63 = vmax.f32 %v1147_v57, 0.0  ;;  %v1150_v1 = vadd.f32 %v4971_v15, %v1149_v60  ;;  %3737 = vmatpush3.bf16.msra.mxu1 %v4230_v52  ;;  %v4234_v15 = vld [vmem:[%s5281_s3 + $0x398] sm:$0xff]   ;;  %v4274_v52 = vmov 0.0|0.0  }
 0x1f2   :  { %v1288_v2 = vmax.f32 %v1158_v24, 0.0  ;;  %3738 = vmatprep.subr.bf16.mxu1 %v4231_v53  ;;  %4012 = vmatprep.subr.bf16.mxu0 %v4274_v52 }
 0x1f3   :  { %v1411_v55 = vmax.f32 %v1285_v63, %v1287_v59  ;;  %v1286_v3 = vmax.f32 %v1150_v1, 0.0 }
 0x1f5   :  { %v1413_v5 = vmax.f32 %v5068_v44, %v1411_v55  ;;  %v1412_v6 = vmax.f32 %v1286_v3, %v1288_v2  ;;  %3739 = vmatpush3.bf16.msra.mxu1 %v4232_v37  ;;  %v4237_v44 = vld [vmem:[%s5281_s3 + $0x3e8] sm:$0xff]  }
 0x1f6   :  { %3740 = vmatprep.subr.bf16.mxu1 %v4233_v46 }
 0x1f7   :  { %v1414_v7 = vmax.f32 %v5070_v47, %v1412_v6  ;;  %v4239_v47 = vld [vmem:[%s5281_s3 + $0x3f0] sm:$0xff]  }
 0x1f9   :  { %3741 = vmatpush3.bf16.msra.mxu1 %v4234_v15  ;;  %v1415_v39 = vpack.c.bf16 %v1414_v7, %v1413_v5 }
 0x1fa   :  { %3742 = vmatprep.subr.bf16.mxu1 %v4235_v48 }
 0x1fb   :  { %2783 = vmatprep.mubr.bf16.mxu1 %v1415_v39 }
 0x1fd   :  { %3743 = vmatpush3.bf16.msra.mxu1 %v4236_v9 }
 0x1fe   :  { %3744 = vmatprep.subr.bf16.mxu1 %v4237_v44 }
 0x1ff   :  { %v3596_v22 = vpop.f32.mrb[0].mxu1 }
 0x200   :  { %v3597_v12 = vpop.f32.mrb[1].mxu1 }
 0x201   :  { %v3598_v16 = vadd.f32 %v3597_v12, %v3596_v22  ;;  %3745 = vmatpush3.bf16.msra.mxu1 %v4238_v11  ;;  %v3599_v13 = vpop.f32.mrb[2].mxu1 }
 0x202   :  { %v3600_v41 = vpop.f32.mrb[3].mxu1  ;;  %3746 = vmatprep.subr.bf16.mxu1 %v4239_v47 }
 0x203   :  { %v3601_v18 = vadd.f32 %v3600_v41, %v3599_v13  ;;  %v2499_v0 = vadd.f32 %v3598_v16, %v3362_v54 }
 0x205   :  { %3747 = vmatpush3.bf16.msra.mxu1 %v4240_v30  ;;  %v2502_v58 = vadd.f32 %v3601_v18, %v3362_v54  ;;  %v2803_v54 = vld [vmem:[%s5283_s5 + $0x8] sm:$0xff] }
 0x206   :  { %3748 = vmatprep.subr.bf16.mxu1 %v4241_v56 }
 0x209   :  { %3749 = vmatpush3.bf16.msra.mxu1 %v4242_v20  ;;  %v3012_v20 = vld [vmem:[%s5284_s6] sm:$0xff] }
 0x20c   :  { %2784 = vmatmul.mubr.bf16.vlgmr.msra.gmra.mrb[28].mxu1 %v1407_v61  ;;  %v4276_v61 = vmov 0.0  }
 0x20d   :  { %3942 = vmatprep.mubr.msk.f32.mxu1 %vm2818_vm0, %v2802_v19  ;;  %3970 = vmatprep.mubr.msk.f32.mxu0 %vm4275_vm1, %v4276_v61 }
 0x21f   :  { %v3618_v23 = vpop.f32.mrb[4].mxu1 }
 0x220   :  { %v3619_v25 = vpop.f32.mrb[5].mxu1 }
 0x221   :  { %v3620_v26 = vadd.f32 %v3619_v25, %v3618_v23  ;;  %v3621_v29 = vpop.f32.mrb[6].mxu1  ;;  %v2804_v23 = vld [vmem:[%s5283_s5 + $0x10] sm:$0xff]  ;;  %v2805_v25 = vld [vmem:[%s5283_s5 + $0x18] sm:$0xff] }
 0x222   :  { %v3622_v31 = vpop.f32.mrb[7].mxu1 }
 0x223   :  { %v2540_v21 = vadd.f32 %v3620_v26, %v2499_v0  ;;  %v3623_v33 = vadd.f32 %v3622_v31, %v3621_v29  ;;  %v2806_v0 = vld [vmem:[%s5283_s5 + $0x20] sm:$0xff]  ;;  %v2807_v26 = vld [vmem:[%s5283_s5 + $0x28] sm:$0xff]  ;;  %v2808_v29 = vld [vmem:[%s5283_s5 + $0x30] sm:$0xff] }
 0x224   :  { %v2809_v31 = vld [vmem:[%s5283_s5 + $0x38] sm:$0xff] }
 0x225   :  { %v2543_v34 = vadd.f32 %v3623_v33, %v2502_v58  ;;  %v2810_v58 = vld [vmem:[%s5283_s5 + $0x40] sm:$0xff]  ;;  %v2812_v33 = vld [vmem:[%s5283_s5 + $0x50] sm:$0xff] }
 0x23f   :  { %v3640_v35 = vpop.f32.mrb[8].mxu1 }
 0x240   :  { %v3641_v49 = vpop.f32.mrb[9].mxu1 }
 0x241   :  { %v3642_v36 = vadd.f32 %v3641_v49, %v3640_v35  ;;  %v3643_v27 = vpop.f32.mrb[10].mxu1  ;;  %v2814_v35 = vld [vmem:[%s5283_s5 + $0x60] sm:$0xff]  ;;  %v2815_v49 = vld [vmem:[%s5283_s5 + $0x68] sm:$0xff] }
 0x242   :  { %v3644_v38 = vpop.f32.mrb[11].mxu1 }
 0x243   :  { %v2581_v14 = vadd.f32 %v3642_v36, %v2540_v21  ;;  %v3645_v40 = vadd.f32 %v3644_v38, %v3643_v27  ;;  %v2811_v21 = vld [vmem:[%s5283_s5 + $0x48] sm:$0xff]  ;;  %v2816_v36 = vld [vmem:[%s5283_s5 + $0x70] sm:$0xff]  ;;  %v2817_v27 = vld [vmem:[%s5283_s5 + $0x78] sm:$0xff] }
 0x245   :  { %v2584_v42 = vadd.f32 %v3645_v40, %v2543_v34  ;;  %v2813_v34 = vld [vmem:[%s5283_s5 + $0x58] sm:$0xff] }
 0x25f   :  { %v3662_v62 = vpop.f32.mrb[12].mxu1 }
 0x260   :  { %v3663_v43 = vpop.f32.mrb[13].mxu1 }
 0x261   :  { %v3664_v4 = vadd.f32 %v3663_v43, %v3662_v62  ;;  %v3665_v8 = vpop.f32.mrb[14].mxu1 }
 0x262   :  { %v3666_v45 = vpop.f32.mrb[15].mxu1 }
 0x263   :  { %v2622_v17 = vadd.f32 %v3664_v4, %v2581_v14  ;;  %v3667_v50 = vadd.f32 %v3666_v45, %v3665_v8 }
 0x265   :  { %v2625_v51 = vadd.f32 %v3667_v50, %v2584_v42 }
 0x27f   :  { %v3684_v10 = vpop.f32.mrb[16].mxu1 }
 0x280   :  { %v3685_v53 = vpop.f32.mrb[17].mxu1 }
 0x281   :  { %v3686_v32 = vadd.f32 %v3685_v53, %v3684_v10  ;;  %v3687_v57 = vpop.f32.mrb[18].mxu1 }
 0x282   :  { %v3688_v28 = vpop.f32.mrb[19].mxu1 }
 0x283   :  { %v2663_v59 = vadd.f32 %v3686_v32, %v2622_v17  ;;  %v3689_v24 = vadd.f32 %v3688_v28, %v3687_v57 }
 0x285   :  { %v2666_v60 = vadd.f32 %v3689_v24, %v2625_v51 }
 0x29f   :  { %v3706_v63 = vpop.f32.mrb[20].mxu1 }
 0x2a0   :  { %v3707_v1 = vpop.f32.mrb[21].mxu1 }
 0x2a1   :  { %v3708_v37 = vadd.f32 %v3707_v1, %v3706_v63  ;;  %v3709_v2 = vpop.f32.mrb[22].mxu1 }
 0x2a2   :  { %v3710_v46 = vpop.f32.mrb[23].mxu1 }
 0x2a3   :  { %v2704_v55 = vadd.f32 %v3708_v37, %v2663_v59  ;;  %v3711_v3 = vadd.f32 %v3710_v46, %v3709_v2 }
 0x2a5   :  { %v2707_v5 = vadd.f32 %v3711_v3, %v2666_v60 }
 0x2bf   :  { %v3728_v6 = vpop.f32.mrb[24].mxu1 }
 0x2c0   :  { %v3729_v15 = vpop.f32.mrb[25].mxu1 }
 0x2c1   :  { %v3730_v48 = vadd.f32 %v3729_v15, %v3728_v6  ;;  %v3731_v7 = vpop.f32.mrb[26].mxu1 }
 0x2c2   :  { %v3732_v39 = vpop.f32.mrb[27].mxu1 }
 0x2c3   :  { %v2745_v9 = vadd.f32 %v3730_v48, %v2704_v55  ;;  %v3733_v44 = vadd.f32 %v3732_v39, %v3731_v7 }
 0x2c5   :  { %v2748_v11 = vadd.f32 %v3733_v44, %v2707_v5 }
 0x2df   :  { %v3750_v47 = vpop.f32.mrb[28].mxu1 }
 0x2e0   :  { %v3751_v22 = vpop.f32.mrb[29].mxu1 }
 0x2e1   :  { %v3752_v12 = vadd.f32 %v3751_v22, %v3750_v47  ;;  %v3753_v16 = vpop.f32.mrb[30].mxu1 }
 0x2e2   :  { %v3754_v13 = vpop.f32.mrb[31].mxu1 }
 0x2e3   :  { %v2786_v30 = vadd.f32 %v3752_v12, %v2745_v9  ;;  %v3755_v41 = vadd.f32 %v3754_v13, %v3753_v16 }
 0x2e5   :  { %v2789_v56 = vadd.f32 %v3755_v41, %v2748_v11 }
 0x2e7   :  { %v4008_v18 = vpack.c.bf16 %v2789_v56, %v2786_v30 }
 0x2e9   :  { %4009 = vmatprep.subr.bf16.mxu1 %v4008_v18  ;;  %4014 = vmatpush3.bf16.msra.mxu0 %v4008_v18 }
 0x2ea   :  { %4011 = vmatpush3.bf16.msra.mxu1 %v4008_v18 }
 0x2eb   :  { %4015 = vmatprep.subr.bf16.mxu1 %v4274_v52 }
 0x2ec   :  { %3971 = vmatmul.mubr.msk.f32.vlgmr.msra.gmra.mrb[128].mxu0 %vm2818_vm0, %v3012_v20 }
 0x2ed   :  { %3943 = vmatmul.mubr.msk.f32.vlgmr.msra.gmra.mrb[32].mxu1 %vm2818_vm0, %v2803_v54 }
 0x2ee   :  { %3945 = vmatprep.mubr.msk.f32.mxu1 %vm2818_vm0, %v2804_v23 }
 0x2f1   :  { %3946 = vmatmul.mubr.msk.f32.gmra.mrb[34].mxu1 %vm2818_vm0, %v2805_v25 }
 0x2f2   :  { %3948 = vmatprep.mubr.msk.f32.mxu1 %vm2818_vm0, %v2806_v0 }
 0x2f5   :  { %3949 = vmatmul.mubr.msk.f32.gmra.mrb[36].mxu1 %vm2818_vm0, %v2807_v26 }
 0x2f6   :  { %3951 = vmatprep.mubr.msk.f32.mxu1 %vm2818_vm0, %v2808_v29 }
 0x2f9   :  { %3952 = vmatmul.mubr.msk.f32.gmra.mrb[38].mxu1 %vm2818_vm0, %v2809_v31 }
 0x2fa   :  { %3954 = vmatprep.mubr.msk.f32.mxu1 %vm2818_vm0, %v2810_v58 }
 0x2fd   :  { %3955 = vmatmul.mubr.msk.f32.gmra.mrb[40].mxu1 %vm2818_vm0, %v2811_v21 }
 0x2fe   :  { %3957 = vmatprep.mubr.msk.f32.mxu1 %vm2818_vm0, %v2812_v33 }
 0x301   :  { %3958 = vmatmul.mubr.msk.f32.gmra.mrb[42].mxu1 %vm2818_vm0, %v2813_v34 }
 0x302   :  { %3960 = vmatprep.mubr.msk.f32.mxu1 %vm2818_vm0, %v2814_v35 }
 0x305   :  { %3961 = vmatmul.mubr.msk.f32.gmra.mrb[44].mxu1 %vm2818_vm0, %v2815_v49 }
 0x306   :  { %3963 = vmatprep.mubr.msk.f32.mxu1 %vm2818_vm0, %v2816_v36 }
 0x309   :  { %3964 = vmatmul.mubr.msk.f32.gmra.mrb[46].mxu1 %vm2818_vm0, %v2817_v27 }
 0x30a   :  { %4005 = vmatprep.mubr.msk.f32.mxu1 %vm4275_vm1, %v4276_v61 }
 0x3bf   :  { %v5248_v38 = vpop.f32.mrb[128].mxu0 }
 0x3c0   :  { %v3944_v14 = vpop.f32.mrb[32].mxu1  ;;  %v3188_v40 = vmul.f32 %v5248_v38, %v5248_v38  ;;  %v3972_v42 = vpop.f32.mrb[129].mxu0 }
 0x3c1   :  { %v2933_v62 = vpop.f32.mrb[33].mxu1 }
 0x3c2   :  { %3086 = vxpose.xlu0.b32.start [1/16] %v2933_v62, 128  ;;  %3189 = vadd.xlane.f32.xlu1 %v3188_v40 }
 0x3c4   :  { %v3947_v43 = vpop.f32.mrb[34].mxu1 }
 0x3c5   :  { %v2943_v4 = vpop.f32.mrb[35].mxu1 }
 0x3c6   :  { %3087 = vxpose.xlu0.b32.cont [2/16] %v3944_v14, 128 }
 0x3c8   :  { %v3950_v8 = vpop.f32.mrb[36].mxu1 }
 0x3c9   :  { %v2953_v45 = vpop.f32.mrb[37].mxu1 }
 0x3ca   :  { %3088 = vxpose.xlu0.b32.cont [3/16] %v2943_v4, 128 }
 0x3cc   :  { %v3953_v17 = vpop.f32.mrb[38].mxu1 }
 0x3cd   :  { %v2963_v50 = vpop.f32.mrb[39].mxu1 }
 0x3ce   :  { %3089 = vxpose.xlu0.b32.cont [4/16] %v3947_v43, 128 }
 0x3d0   :  { %v3956_v51 = vpop.f32.mrb[40].mxu1 }
 0x3d1   :  { %v2973_v19 = vpop.f32.mrb[41].mxu1 }
 0x3d2   :  { %3090 = vxpose.xlu0.b32.cont [5/16] %v2953_v45, 128 }
 0x3d4   :  { %v3959_v10 = vpop.f32.mrb[42].mxu1 }
 0x3d5   :  { %v2983_v53 = vpop.f32.mrb[43].mxu1 }
 0x3d6   :  { %3091 = vxpose.xlu0.b32.cont [6/16] %v3950_v8, 128 }
 0x3d8   :  { %v3962_v32 = vpop.f32.mrb[44].mxu1 }
 0x3d9   :  { %v2993_v57 = vpop.f32.mrb[45].mxu1 }
 0x3da   :  { %3092 = vxpose.xlu0.b32.cont [7/16] %v2963_v50, 128 }
 0x3dc   :  { %v3965_v28 = vpop.f32.mrb[46].mxu1 }
 0x3dd   :  { %v3003_v59 = vpop.f32.mrb[47].mxu1 }
 0x3de   :  { %3093 = vxpose.xlu0.b32.cont [8/16] %v3953_v17, 128 }
 0x3e2   :  { %3094 = vxpose.xlu0.b32.cont [9/16] %v2973_v19, 128 }
 0x3e6   :  { %3095 = vxpose.xlu0.b32.cont [10/16] %v3956_v51, 128 }
 0x3ea   :  { %3096 = vxpose.xlu0.b32.cont [11/16] %v2983_v53, 128 }
 0x3ee   :  { %3097 = vxpose.xlu0.b32.cont [12/16] %v3959_v10, 128 }
 0x3f2   :  { %3098 = vxpose.xlu0.b32.cont [13/16] %v2993_v57, 128 }
 0x3f6   :  { %3099 = vxpose.xlu0.b32.cont [14/16] %v3962_v32, 128 }
 0x3fa   :  { %3100 = vxpose.xlu0.b32.cont [15/16] %v3003_v59, 128 }
 0x3fe   :  { %3101 = vxpose.xlu0.b32.end [16/16] %v3965_v28, 128 }
 0x442   :  { %v3102_v24 = vpop.trf.xlu0 }
 0x443   :  { %v3191_v61 = vmul.f32 %v3102_v24, %v3102_v24 }
 0x446   :  { %v3103_v60 = vpop.trf.xlu0 }
 0x447   :  { %v4016_v63 = vpack.c.bf16 %v3103_v60, %v3102_v24  ;;  %v3192_v1 = vmul.f32 %v3103_v60, %v3103_v60 }
 0x449   :  { %v3207_v37 = vadd.f32 %v3192_v1, %v3191_v61  ;;  %4017 = vmatpush3.bf16.msra.mxu1 %v4016_v63 }
 0x44a   :  { %v3104_v2 = vpop.trf.xlu0  ;;  %4018 = vmatprep.subr.bf16.mxu1 %v4274_v52 }
 0x44b   :  { %v3193_v46 = vmul.f32 %v3104_v2, %v3104_v2 }
 0x44d   :  { %v3208_v55 = vadd.f32 %v3207_v37, %v3193_v46  ;;  %v3239_v37 = vlaneseq }
 0x44e   :  { %v3105_v3 = vpop.trf.xlu0 }
 0x44f   :  { %v4019_v5 = vpack.c.bf16 %v3105_v3, %v3104_v2  ;;  %v3194_v6 = vmul.f32 %v3105_v3, %v3105_v3  ;;  %v3190_v59 = vpop.xlane.xlu1 %3189  ;;  %v3240_v46 = vand.u32 127, %v3239_v37 }
 0x451   :  { %v3209_v15 = vadd.f32 %v3208_v55, %v3194_v6  ;;  %4020 = vmatpush3.bf16.msra.mxu1 %v4019_v5  ;;  %vm3241_vm4 = vcmp.lt.s32.totalorder %v3240_v46, 4 }
 0x452   :  { %v3106_v48 = vpop.trf.xlu0  ;;  %4021 = vmatprep.subr.bf16.mxu1 %v4274_v52 }
 0x453   :  { %v3195_v7 = vmul.f32 %v3106_v48, %v3106_v48 }
 0x455   :  { %v3210_v39 = vadd.f32 %v3209_v15, %v3195_v7 }
 0x456   :  { %v3107_v9 = vpop.trf.xlu0 }
 0x457   :  { %v4022_v44 = vpack.c.bf16 %v3107_v9, %v3106_v48  ;;  %v3196_v11 = vmul.f32 %v3107_v9, %v3107_v9 }
 0x459   :  { %v3211_v47 = vadd.f32 %v3210_v39, %v3196_v11  ;;  %4023 = vmatpush3.bf16.msra.mxu1 %v4022_v44 }
 0x45a   :  { %v3108_v22 = vpop.trf.xlu0  ;;  %4024 = vmatprep.subr.bf16.mxu1 %v4274_v52 }
 0x45b   :  { %v3197_v12 = vmul.f32 %v3108_v22, %v3108_v22 }
 0x45d   :  { %v3212_v16 = vadd.f32 %v3211_v47, %v3197_v12  ;;  %v3254_v12 = vld [vmem:[%s5285_s7] sm:$0xff] }
 0x45e   :  { %v3109_v13 = vpop.trf.xlu0 }
 0x45f   :  { %v4025_v30 = vpack.c.bf16 %v3109_v13, %v3108_v22  ;;  %v3198_v41 = vmul.f32 %v3109_v13, %v3109_v13 }
 0x461   :  { %v3213_v56 = vadd.f32 %v3212_v16, %v3198_v41  ;;  %4026 = vmatpush3.bf16.msra.mxu1 %v4025_v30 }
 0x462   :  { %v3110_v18 = vpop.trf.xlu0  ;;  %4027 = vmatprep.subr.bf16.mxu1 %v4274_v52 }
 0x463   :  { %v3199_v20 = vmul.f32 %v3110_v18, %v3110_v18 }
 0x465   :  { %v3214_v54 = vadd.f32 %v3213_v56, %v3199_v20 }
 0x466   :  { %v3111_v23 = vpop.trf.xlu0 }
 0x467   :  { %v4028_v25 = vpack.c.bf16 %v3111_v23, %v3110_v18  ;;  %v3200_v0 = vmul.f32 %v3111_v23, %v3111_v23 }
 0x469   :  { %v3215_v26 = vadd.f32 %v3214_v54, %v3200_v0  ;;  %4029 = vmatpush3.bf16.msra.mxu1 %v4028_v25 }
 0x46a   :  { %v3112_v29 = vpop.trf.xlu0  ;;  %4030 = vmatprep.subr.bf16.mxu1 %v4274_v52 }
 0x46b   :  { %v3201_v31 = vmul.f32 %v3112_v29, %v3112_v29 }
 0x46d   :  { %v3216_v58 = vadd.f32 %v3215_v26, %v3201_v31 }
 0x46e   :  { %v3113_v21 = vpop.trf.xlu0 }
 0x46f   :  { %v4031_v33 = vpack.c.bf16 %v3113_v21, %v3112_v29  ;;  %v3202_v34 = vmul.f32 %v3113_v21, %v3113_v21 }
 0x471   :  { %v3217_v35 = vadd.f32 %v3216_v58, %v3202_v34  ;;  %4032 = vmatpush3.bf16.msra.mxu1 %v4031_v33 }
 0x472   :  { %v3114_v49 = vpop.trf.xlu0  ;;  %4033 = vmatprep.subr.bf16.mxu1 %v4274_v52 }
 0x473   :  { %v3203_v36 = vmul.f32 %v3114_v49, %v3114_v49 }
 0x475   :  { %v3218_v27 = vadd.f32 %v3217_v35, %v3203_v36 }
 0x476   :  { %v3115_v14 = vpop.trf.xlu0 }
 0x477   :  { %v4034_v40 = vpack.c.bf16 %v3115_v14, %v3114_v49  ;;  %v3204_v42 = vmul.f32 %v3115_v14, %v3115_v14 }
 0x479   :  { %v3219_v62 = vadd.f32 %v3218_v27, %v3204_v42  ;;  %4035 = vmatpush3.bf16.msra.mxu1 %v4034_v40 }
 0x47a   :  { %v3116_v43 = vpop.trf.xlu0  ;;  %4036 = vmatprep.subr.bf16.mxu1 %v4274_v52 }
 0x47b   :  { %v3205_v4 = vmul.f32 %v3116_v43, %v3116_v43 }
 0x47d   :  { %v3220_v8 = vadd.f32 %v3219_v62, %v3205_v4 }
 0x47e   :  { %v3117_v45 = vpop.trf.xlu0 }
 0x47f   :  { %v4037_v17 = vpack.c.bf16 %v3117_v45, %v3116_v43  ;;  %v3206_v50 = vmul.f32 %v3117_v45, %v3117_v45 }
 0x481   :  { %v3221_v51 = vadd.f32 %v3220_v8, %v3206_v50  ;;  %4038 = vmatpush3.bf16.msra.mxu1 %v4037_v17 }
 0x483   :  { %v3222_v19 = vrot.slane %v3221_v51, 4 }
 0x484   :  { %4006 = vmatmul.mubr.f32.vlgmr.msra.gmra.mrb[48].mxu1 %v5248_v38 }
 0x485   :  { %v3223_v10 = vadd.f32 %v3222_v19, %v3221_v51 }
 0x487   :  { %v3224_v53 = vrot.slane %v3223_v10, 2 }
 0x489   :  { %v3225_v32 = vadd.f32 %v3224_v53, %v3223_v10 }
 0x48b   :  { %v3226_v57 = vrot.slane %v3225_v32, 1 }
 0x48d   :  { %v3227_v28 = vadd.f32 %v3226_v57, %v3225_v32 }
 0x48f   :  { %v3228_v60 = vadd.f32 %v3227_v28, %v3190_v59 }
 0x557   :  { %v3184_v24 = vpop.f32.mrb[48].mxu1 }
 0x558   :  { %v3229_v61 = vmul.f32 2.0, %v3184_v24  ;;  %v4007_v52 = vpop.f32.mrb[49].mxu1 }
 0x55a   :  { %v3230_v63 = vsub.f32 %v3228_v60, %v3229_v61 }
 0x55c   :  { %v3231_v1 = vmax.f32 %v3230_v63, 0.0 }
 0x55e   :  { %4243 = vrsqrt.f32 %v3231_v1  ;;  %vm3234_vm2 = vcmp.eq.f32.partialorder %v3231_v1, inf  ;;  %v3237_v38 = vand.u32 2147483648, %v3231_v1  ;;  %vm3236_vm3 = vcmp.eq.f32.partialorder %v3231_v1, 0.0 }
 0x568   :  { %v4244_v2 = vpop.eup %4243 }
 0x569   :  { %v3233_v55 = vmul.f32 %v4244_v2, %v3231_v1 }
 0x56b   :  { %v3235_v3 = vsel %vm3234_vm2, %v3231_v1, %v3233_v55 }
 0x56c   :  { %v3238_v5 = vsel %vm3236_vm3, %v3237_v38, %v3235_v3 }
 0x56d   :  { %v3242_v6 = vsub.f32 0.0, %v3238_v5 }
 0x56f   :  { %v3243_v15 = vsel %vm3241_vm4, %v3242_v6, -1e+30 }
 0x570   :  { %3244 = vmax.xlane.f32.xlu1 %v3243_v15  ;;  %3270 = vst [vmem:[%s5287_s9] sm:$0xff] %v3243_v15  ;;  %s4277_s9 = smov [#allocation4]  }
 0x571   :  { %s3277_s6 = sshll.u32 %s4277_s9, 4  ;;  %s3278_s6 = int_to_ptr.vmem [resolvable:$true] %s3277_s6 }
 0x572   :  { %s4250_s2 = scalar_lea.vmem %s3278_s6, 16  ;;  %s4254_s7 = scalar_lea.vmem %s3278_s6, 32 }
 0x573   :  { %p4251_p0 = scmp.ne.s32.totalorder %s3278_s6, %s4250_s2  ;;  %p4255_p1 = scmp.lt.s32.totalorder %s3278_s6, %s3278_s6 }
 0x574   :  { %p4256_p2 = scmp.lt.s32.totalorder %s4254_s7, %s4250_s2 }
 0x576   :  { %p4257_p3 = por %p4256_p2, %p4255_p1 }
 0x578   :  { %p4258_p4 = pnand %p4257_p3, %p4251_p0 }
 0x5fd   :  { %v3245_v48 = vpop.xlane.xlu1 %3244 }
 0x5fe   :  { %v3246_v7 = vsub.f32 %v3243_v15, %v3245_v48 }
 0x600   :  { %v3247_v39 = vmul.f32 1.442695, %v3246_v7 }
 0x602   :  { %4245 = vpow2.f32 %v3247_v39 }
 0x60c   :  { %v4246_v9 = vpop.eup %4245 }
 0x60d   :  { %3249 = vadd.xlane.f32.xlu1 %v4246_v9 }
 0x69a   :  { %v3250_v44 = vpop.xlane.xlu1 %3249 }
 0x69b   :  { %4247 = vlog2.f32 %v3250_v44 }
 0x6a5   :  { %v4248_v11 = vpop.eup %4247 }
 0x6a6   :  { %v3252_v47 = vmul.f32 0.6931472, %v4248_v11 }
 0x6a8   :  { %v3253_v22 = vadd.f32 %v3252_v47, %v3245_v48 }
 0x6aa   :  { %v3255_v16 = vsub.f32 %v3243_v15, %v3253_v22 }
 0x6ac   :  { %v3256_v13 = vmul.f32 %v3255_v16, %v3254_v12 }
 0x6ae   :  { %3257 = vadd.xlane.f32.xlu1 %v3256_v13 }
 0x73b   :  { %v3258_v30 = vpop.xlane.xlu1 %3257 }
 0x73c   :  { %v3259_v41 = vsub.f32 0.0, %v3258_v30 }
 0x73e   :  { %v3260_v56 = vrot.slane %v3259_v41, 4 }
 0x740   :  { %v3261_v18 = vadd.f32 %v3260_v56, %v3259_v41 }
 0x742   :  { %v3262_v20 = vrot.slane %v3261_v18, 2 }
 0x744   :  { %v3263_v54 = vadd.f32 %v3262_v20, %v3261_v18 }
 0x746   :  { %v3264_v23 = vrot.slane %v3263_v54, 1 }
 0x748   :  { %v3265_v25 = vadd.f32 %v3264_v23, %v3263_v54 }
 0x74a   :  { %v3267_v0 = vmul.f32 0.125, %v3265_v25 }
 0x74c   :  { %3269 = vst.msk [vmem:[#allocation4] sm:$0x1] %vm3268_vm5, %v3267_v0 }
 0x74d   :  { %4261 = shalt.err (!%p4258_p4)
}
 0x74e   :  { %s4262_s14 = scalar_lea.hbm %s5286_s8, 16 }
 0x74f   :  { %p4263_p5 = scmp.ne.s32.totalorder %s5286_s8, %s4262_s14  ;;  %p4266_p6 = scmp.lt.u32.totalorder %s4262_s14, %s5286_s8 }
 0x751   :  { %p4268_p7 = pnand %p4266_p6, %p4263_p5 }
 0x753   :  { %4271 = shalt.err (!%p4268_p7)
}
 0x754   :  { %3280 = dma.vmem_to_hbm [thread:$0]  %s3278_s6, 16, %s5286_s8, [#allocation5]  }
 0x755   :  { %4272 = dma.done.wait [#allocation5], 16  }
 0x756   :  { %4273 = vsyncadd [#allocation5], 4294967280 }
 0x757   :  { %3288 = vsyncpa [#allocation5], 1 }

</bundles_post_ra>
